<compile_context>
chip_gen: v6e
topology: v6e:2x2x1
jax: 0.10.0
libtpu: 0.0.40
codegen_flags: <defaults>
</compile_context>

<pallas_src>
import functools

import jax
import jax.numpy as jnp
from jax.experimental import pallas as pl
from jax.experimental.pallas import tpu as pltpu

GROUPS = 8
EPS = 1e-5


def _silu(v):
    return v * jax.nn.sigmoid(v)


def _round_up(n, m):
    return ((n + m - 1) // m) * m


def convblock_kernel(H, W, LPAD, CP1, CP2, has_sc,
                     x_ref, temb_ref, w1_ref, w2_ref, scw_ref, vecs_ref,
                     gproj_ref, o_ref, xq_ref, slab_ref):
    HW = H * W
    CPmax, QW = xq_ref.shape
    bf16 = jnp.bfloat16

    # Re-zero only the halo strips every step.  The interior [LPAD, LPAD+HW)
    # is fully rewritten before each read; doing this unconditionally per step
    # keeps it correct when the batch grid axis is sharded across TensorCores.
    xq_ref[:, :LPAD] = jnp.zeros((CPmax, LPAD), bf16)
    xq_ref[:, LPAD + HW:] = jnp.zeros((CPmax, QW - LPAD - HW), bf16)

    # Column wrap-around masks shared by both convs (row out-of-range taps
    # land in the zero halo of the flat-padded scratch).
    colidx = jax.lax.broadcasted_iota(jnp.int32, (1, HW), 1) % W
    cmask = {-1: (colidx >= 1).astype(bf16),
             1: (colidx <= W - 2).astype(bf16)}

    gproj = gproj_ref[...]          # (Cout, Cout) group projection /(cg*HW), f32
    vecs = vecs_ref[...]            # (Cout, 8) packed per-channel vectors, f32
    b1, g1, be1 = vecs[:, 0:1], vecs[:, 1:2], vecs[:, 2:3]
    b2, g2, be2 = vecs[:, 3:4], vecs[:, 4:5], vecs[:, 5:6]
    scb = vecs[:, 6:7]

    def conv3x3(a, CP, w, b):
        """a: (C, HW) f32; w: (Cout, 9*CP) bf16; b: (Cout, 1) f32 -> f32."""
        C = a.shape[0]
        if C < CP:   # keep every bf16 store 16-sublane aligned
            a = jnp.concatenate([a, jnp.zeros((CP - C, HW), a.dtype)], axis=0)
        # Stage the activation in bf16 into the flat-padded scratch.
        xq_ref[:CP, LPAD:LPAD + HW] = a.astype(bf16)
        # Build the (9*CP, HW) bf16 im2col slab: one shifted+masked tap copy.
        for ky in range(3):
            for kx in range(3):
                dy, dx = ky - 1, kx - 1
                s = dy * W + dx
                tap = xq_ref[:CP, LPAD + s:LPAD + s + HW]
                if dx != 0:
                    tap = tap * cmask[dx]
                t = ky * 3 + kx
                slab_ref[t * CP:(t + 1) * CP, :] = tap
        # Single bf16 MXU matmul per conv, f32 accumulate.
        return jnp.dot(w, slab_ref[:9 * CP, :],
                       preferred_element_type=jnp.float32) + b

    def group_norm(h, gamma, beta):
        """Reduce-then-project GroupNorm (f32 statistics, two-pass variance)."""
        s = jnp.sum(h, axis=1, keepdims=True)                       # (Cout, 1)
        mean = jnp.dot(gproj, s, precision=jax.lax.Precision.HIGHEST,
                       preferred_element_type=jnp.float32)          # (Cout, 1)
        d = h - mean
        ss = jnp.sum(d * d, axis=1, keepdims=True)                  # (Cout, 1)
        var = jnp.dot(gproj, ss, precision=jax.lax.Precision.HIGHEST,
                      preferred_element_type=jnp.float32)           # (Cout, 1)
        return d * jax.lax.rsqrt(var + EPS) * gamma + beta

    x = x_ref[0]                                                    # (CP1, HW) f32

    # conv1 -> GroupNorm1 -> + time embedding -> SiLU
    h = conv3x3(x, CP1, w1_ref[...], b1)
    h = group_norm(h, g1, be1)
    h = _silu(h + temb_ref[0])

    # conv2 -> GroupNorm2 -> SiLU
    h = conv3x3(h, CP2, w2_ref[...], b2)
    h = _silu(group_norm(h, g2, be2))

    # Shortcut: 1x1 conv when channel counts differ, plain add otherwise.
    if has_sc:
        sc = jnp.dot(scw_ref[...], x.astype(bf16),
                     preferred_element_type=jnp.float32) + scb
    else:
        sc = x[:o_ref.shape[1], :]

    o_ref[0] = h + sc                                               # lane-dense store


@jax.jit
def conv_block(x, t, params):
    """x: (B, Cin, H, W) NCHW; t: (B, Tc); params in PyTorch-native layouts."""
    B, Cin, H, W = x.shape
    Cout = params["conv1_w"].shape[0]
    assert Cout % GROUPS == 0
    HW = H * W
    # Channel paddings rounded to 16 so all bf16 sublane slices stay aligned.
    CP1 = _round_up(Cin, 16)
    CP2 = _round_up(Cout, 16)
    CPmax = max(CP1, CP2)
    # Halo must cover W+1 columns and stay lane (128) aligned.
    LPAD = _round_up(W + 1, 128)
    QW = LPAD + HW + LPAD

    # Activations: channels-first, HW flattened, channel-padded (no spatial pad).
    xf = x.reshape(B, Cin, HW)
    if CP1 != Cin:
        xf = jnp.pad(xf, ((0, 0), (0, CP1 - Cin), (0, 0)))

    # Conv weights (OIHW) -> im2col matrices (Cout, 9*CP) in bf16, K = tap*CP + c.
    def im2col_w(w, c_p):
        cout, c = w.shape[:2]
        wp = jnp.pad(w, ((0, 0), (0, c_p - c), (0, 0), (0, 0)))
        return (jnp.transpose(wp, (0, 2, 3, 1))
                .reshape(cout, 9 * c_p).astype(jnp.bfloat16))

    w1 = im2col_w(params["conv1_w"], CP1)
    w2 = im2col_w(params["conv2_w"], CP2)

    has_sc = "sc_w" in params
    if has_sc:
        scw = params["sc_w"].reshape(Cout, Cin)
        scw = jnp.pad(scw, ((0, 0), (0, CP1 - Cin))).astype(jnp.bfloat16)
        sc_b = params["sc_b"]
    else:
        scw = jnp.zeros((Cout, CP1), jnp.bfloat16)      # unused (identity path)
        sc_b = jnp.zeros((Cout,), jnp.float32)

    # Pack every per-channel vector into a single (Cout, 8) operand (one DMA).
    vecs = jnp.stack(
        [params["conv1_b"], params["norm1_g"], params["norm1_b"],
         params["conv2_b"], params["norm2_g"], params["norm2_b"],
         sc_b, jnp.zeros((Cout,), jnp.float32)], axis=1).astype(jnp.float32)

    # Time MLP once for the whole batch (tiny, done by XLA), shaped (B, Cout, 1).
    temb = (t @ params["time_w"].T + params["time_b"]).reshape(B, Cout, 1)
    temb = temb.astype(jnp.float32)

    # GroupNorm group-average projection: gproj[c,c'] = 1/(cg*HW) if same group.
    cg = Cout // GROUPS
    gid = jnp.arange(Cout) // cg
    gproj = (gid[:, None] == gid[None, :]).astype(jnp.float32) / (cg * HW)

    def full(shape):
        return pl.BlockSpec(shape, lambda b, _n=len(shape): (0,) * _n)

    # Explicit VMEM budget: bf16 scratch + double-buffered pipeline blocks.
    blk = (CP1 * HW * 4 + Cout * 4                      # x block, temb block
           + Cout * 9 * CP1 * 2 + Cout * 9 * CP2 * 2    # bf16 conv weights
           + Cout * CP1 * 2                             # bf16 shortcut weight
           + Cout * 8 * 4 + Cout * Cout * 4             # vecs, gproj
           + Cout * HW * 4)                             # out block
    scr = (CPmax * QW + 9 * CPmax * HW) * 2
    vmem_limit = min(max(2 * (2 * blk + scr), 32 * 1024 * 1024),
                     128 * 1024 * 1024)

    grid_spec = pltpu.PrefetchScalarGridSpec(
        num_scalar_prefetch=0,
        grid=(B,),
        in_specs=[
            pl.BlockSpec((1, CP1, HW), lambda b: (b, 0, 0)),   # x (flat, padded C)
            pl.BlockSpec((1, Cout, 1), lambda b: (b, 0, 0)),   # time embedding
            full((Cout, 9 * CP1)),     # conv1 weight (im2col, bf16)
            full((Cout, 9 * CP2)),     # conv2 weight (im2col, bf16)
            full((Cout, CP1)),         # shortcut weight (bf16)
            full((Cout, 8)),           # packed per-channel vectors (f32)
            full((Cout, Cout)),        # GroupNorm group projection (f32)
        ],
        out_specs=pl.BlockSpec((1, Cout, HW), lambda b: (b, 0, 0)),
        scratch_shapes=[
            pltpu.VMEM((CPmax, QW), jnp.bfloat16),       # flat-padded activation
            pltpu.VMEM((9 * CPmax, HW), jnp.bfloat16),   # im2col slab
        ],
    )
    out = pl.pallas_call(
        functools.partial(convblock_kernel, H, W, LPAD, CP1, CP2, has_sc),
        out_shape=jax.ShapeDtypeStruct((B, Cout, HW), jnp.float32),
        grid_spec=grid_spec,
        compiler_params=pltpu.CompilerParams(
            dimension_semantics=("parallel",),
            vmem_limit_bytes=vmem_limit),
    )(xf, temb, w1, w2, scw, vecs, gproj)
    return out.reshape(B, Cout, H, W)


# ---------------- pure-JAX reference (matches PyTorch semantics) ----------------
def _group_norm_ref(h, gamma, beta):
    B, C, H, W = h.shape
    cg = C // GROUPS
    hg = h.reshape(B, GROUPS, cg, H, W)
    mean = jnp.mean(hg, axis=(2, 3, 4), keepdims=True)
    var = jnp.mean((hg - mean) ** 2, axis=(2, 3, 4), keepdims=True)
    hn = (hg - mean) * jax.lax.rsqrt(var + EPS)
    return (hn.reshape(B, C, H, W) * gamma[None, :, None, None]
            + beta[None, :, None, None])


def reference(x, t, p, conv_dtype=jnp.float32):
    dn = ("NCHW", "OIHW", "NCHW")

    def conv(a, w):
        return jax.lax.conv_general_dilated(
            a.astype(conv_dtype), w.astype(conv_dtype), (1, 1), "SAME",
            dimension_numbers=dn, preferred_element_type=jnp.float32)

    h = conv(x, p["conv1_w"]) + p["conv1_b"][None, :, None, None]
    h = _group_norm_ref(h, p["norm1_g"], p["norm1_b"])
    temb = t @ p["time_w"].T + p["time_b"]
    h = h + temb[:, :, None, None]
    h = h * jax.nn.sigmoid(h)
    h = conv(h, p["conv2_w"]) + p["conv2_b"][None, :, None, None]
    h = _group_norm_ref(h, p["norm2_g"], p["norm2_b"])
    h = h * jax.nn.sigmoid(h)
    if "sc_w" in p:
        sc = conv(x, p["sc_w"]) + p["sc_b"][None, :, None, None]
    else:
        sc = x
    return h + sc


if __name__ == "__main__":
    B, H, W = 2, 16, 16
    Cin, Cout, Tc = 4, 16, 8   # out_channels divisible by 8 (GroupNorm groups)

    key = jax.random.PRNGKey(0)
    ks = jax.random.split(key, 16)
    x = jax.random.normal(ks[0], (B, Cin, H, W), jnp.float32)   # NCHW, as in PyTorch
    t = jax.random.normal(ks[1], (B, Tc), jnp.float32)

    params = dict(
        conv1_w=0.2 * jax.random.normal(ks[2], (Cout, Cin, 3, 3), jnp.float32),
        conv1_b=0.1 * jax.random.normal(ks[3], (Cout,), jnp.float32),
        norm1_g=1.0 + 0.1 * jax.random.normal(ks[4], (Cout,), jnp.float32),
        norm1_b=0.1 * jax.random.normal(ks[5], (Cout,), jnp.float32),
        time_w=0.2 * jax.random.normal(ks[6], (Cout, Tc), jnp.float32),
        time_b=0.1 * jax.random.normal(ks[7], (Cout,), jnp.float32),
        conv2_w=0.2 * jax.random.normal(ks[8], (Cout, Cout, 3, 3), jnp.float32),
        conv2_b=0.1 * jax.random.normal(ks[9], (Cout,), jnp.float32),
        norm2_g=1.0 + 0.1 * jax.random.normal(ks[10], (Cout,), jnp.float32),
        norm2_b=0.1 * jax.random.normal(ks[11], (Cout,), jnp.float32),
        # in_channels != out_channels -> 1x1 conv shortcut
        sc_w=0.2 * jax.random.normal(ks[12], (Cout, Cin, 1, 1), jnp.float32),
        sc_b=0.1 * jax.random.normal(ks[13], (Cout,), jnp.float32),
    )

    out = jax.block_until_ready(conv_block(x, t, params))
    assert out.shape == (B, Cout, H, W)

    # Tight check vs a bf16-conv-matched reference (same rounding, f32 accum),
    # loose check vs the exact f32 PyTorch-semantics reference (bf16 drift).
    ref_bf16 = jax.block_until_ready(reference(x, t, params, jnp.bfloat16))
    ref_f32 = jax.block_until_ready(reference(x, t, params, jnp.float32))
    err_tight = float(jnp.max(jnp.abs(out - ref_bf16)))
    err_loose = float(jnp.max(jnp.abs(out - ref_f32)))
    assert err_tight < 2e-2, f"bf16-matched max abs err {err_tight}"
    assert err_loose < 1e-1, f"f32-reference max abs err {err_loose}"
    print("KERNEL_OK")
</pallas_src>

<mosaic_0001>
module attributes {stable_mosaic.version = 11 : i64} {
  func.func @convblock_kernel(%arg0: i32, %arg1: memref<1x16x256xf32, #tpu.memory_space<vmem>>, %arg2: memref<1x16x1xf32, #tpu.memory_space<vmem>>, %arg3: memref<16x144xbf16, #tpu.memory_space<vmem>>, %arg4: memref<16x144xbf16, #tpu.memory_space<vmem>>, %arg5: memref<16x16xbf16, #tpu.memory_space<vmem>>, %arg6: memref<16x8xf32, #tpu.memory_space<vmem>>, %arg7: memref<16x16xf32, #tpu.memory_space<vmem>>, %arg8: memref<1x16x256xf32, #tpu.memory_space<vmem>>, %arg9: memref<16x512xbf16, #tpu.memory_space<vmem>>, %arg10: memref<144x256xbf16, #tpu.memory_space<vmem>>) attributes {dimension_semantics = [#tpu.dimension_semantics<parallel>], iteration_bounds = array<i64: 2>, scalar_prefetch = 0 : i64, scratch_operands = 2 : i64, tpu.core_type = #tpu.core_type<tc>, window_params = [{transform_indices = @transform_0, window_bounds = array<i64: 1, 16, 256>}, {transform_indices = @transform_1, window_bounds = array<i64: 1, 16, 1>}, {pipeline_mode = #tpu.pipeline_mode<synchronous>, transform_indices = @transform_2, window_bounds = array<i64: 16, 144>}, {pipeline_mode = #tpu.pipeline_mode<synchronous>, transform_indices = @transform_3, window_bounds = array<i64: 16, 144>}, {pipeline_mode = #tpu.pipeline_mode<synchronous>, transform_indices = @transform_4, window_bounds = array<i64: 16, 16>}, {pipeline_mode = #tpu.pipeline_mode<synchronous>, transform_indices = @transform_5, window_bounds = array<i64: 16, 8>}, {pipeline_mode = #tpu.pipeline_mode<synchronous>, transform_indices = @transform_6, window_bounds = array<i64: 16, 16>}, {transform_indices = @transform_7, window_bounds = array<i64: 1, 16, 256>}]} {
    %cst = arith.constant 0.000000e+00 : bf16
    %0 = vector.broadcast %cst : bf16 to vector<16x128xbf16>
    %c0 = arith.constant 0 : index
    %c0_0 = arith.constant 0 : index
    %1 = vector.load %arg9[%c0, %c0_0] : memref<16x512xbf16, #tpu.memory_space<vmem>>, vector<16x128xbf16>
    tpu.vector_store %arg9[%c0, %c0_0], %0 {strides = array<i32>} : memref<16x512xbf16, #tpu.memory_space<vmem>>, vector<16x128xbf16>,
    %cst_1 = arith.constant 0.000000e+00 : bf16
    %2 = vector.broadcast %cst_1 : bf16 to vector<16x128xbf16>
    %c0_2 = arith.constant 0 : index
    %c384 = arith.constant 384 : index
    %3 = vector.load %arg9[%c0_2, %c384] : memref<16x512xbf16, #tpu.memory_space<vmem>>, vector<16x128xbf16>
    tpu.vector_store %arg9[%c0_2, %c384], %2 {strides = array<i32>} : memref<16x512xbf16, #tpu.memory_space<vmem>>, vector<16x128xbf16>,
    %4 = tpu.iota {dimensions = array<i32: 1>} : vector<1x256xi32>
    %c16_i32 = arith.constant 16 : i32
    %c0_i32 = arith.constant 0 : i32
    %5 = arith.cmpi eq, %c16_i32, %c0_i32 : i32
    %c1_i32 = arith.constant 1 : i32
    %6 = arith.select %5, %c1_i32, %c16_i32 : i32
    %7 = vector.broadcast %6 : i32 to vector<1x256xi32>
    %8 = arith.remsi %4, %7 : vector<1x256xi32>
    %c0_i32_3 = arith.constant 0 : i32
    %9 = vector.broadcast %c0_i32_3 : i32 to vector<1x256xi32>
    %10 = arith.cmpi ne, %8, %9 : vector<1x256xi32>
    %c0_i32_4 = arith.constant 0 : i32
    %11 = vector.broadcast %c0_i32_4 : i32 to vector<1x256xi32>
    %12 = arith.cmpi slt, %8, %11 : vector<1x256xi32>
    %c0_i32_5 = arith.constant 0 : i32
    %13 = arith.cmpi slt, %6, %c0_i32_5 : i32
    %14 = vector.broadcast %13 : i1 to vector<1x256xi1>
    %15 = vector.broadcast %14 : vector<1x256xi1> to vector<1x256xi1>
    %16 = arith.xori %12, %15 : vector<1x256xi1>
    %17 = arith.andi %16, %10 : vector<1x256xi1>
    %18 = vector.broadcast %6 : i32 to vector<1x256xi32>
    %19 = arith.addi %8, %18 : vector<1x256xi32>
    %20 = arith.select %17, %19, %8 : vector<1x256xi1>, vector<1x256xi32>
    %c1_i32_6 = arith.constant 1 : i32
    %21 = vector.broadcast %c1_i32_6 : i32 to vector<1x256xi32>
    %22 = arith.cmpi sge, %20, %21 : vector<1x256xi32>
    %23 = arith.extui %22 : vector<1x256xi1> to vector<1x256xi32>
    %24 = arith.sitofp %23 : vector<1x256xi32> to vector<1x256xf32>
    %25 = arith.truncf %24 : vector<1x256xf32> to vector<1x256xbf16>
    %c14_i32 = arith.constant 14 : i32
    %26 = vector.broadcast %c14_i32 : i32 to vector<1x256xi32>
    %27 = arith.cmpi sle, %20, %26 : vector<1x256xi32>
    %28 = arith.extui %27 : vector<1x256xi1> to vector<1x256xi32>
    %29 = arith.sitofp %28 : vector<1x256xi32> to vector<1x256xf32>
    %30 = arith.truncf %29 : vector<1x256xf32> to vector<1x256xbf16>
    %c0_7 = arith.constant 0 : index
    %c0_8 = arith.constant 0 : index
    %31 = vector.load %arg7[%c0_7, %c0_8] : memref<16x16xf32, #tpu.memory_space<vmem>>, vector<16x16xf32>
    %c0_9 = arith.constant 0 : index
    %c0_10 = arith.constant 0 : index
    %32 = vector.load %arg6[%c0_9, %c0_10] : memref<16x8xf32, #tpu.memory_space<vmem>>, vector<16x8xf32>
    %33 = vector.extract_strided_slice %32 {offsets = [0, 0], sizes = [16, 1], strides = [1, 1]} : vector<16x8xf32> to vector<16x1xf32>
    %34 = vector.extract_strided_slice %32 {offsets = [0, 1], sizes = [16, 1], strides = [1, 1]} : vector<16x8xf32> to vector<16x1xf32>
    %35 = vector.extract_strided_slice %32 {offsets = [0, 2], sizes = [16, 1], strides = [1, 1]} : vector<16x8xf32> to vector<16x1xf32>
    %36 = vector.extract_strided_slice %32 {offsets = [0, 3], sizes = [16, 1], strides = [1, 1]} : vector<16x8xf32> to vector<16x1xf32>
    %37 = vector.extract_strided_slice %32 {offsets = [0, 4], sizes = [16, 1], strides = [1, 1]} : vector<16x8xf32> to vector<16x1xf32>
    %38 = vector.extract_strided_slice %32 {offsets = [0, 5], sizes = [16, 1], strides = [1, 1]} : vector<16x8xf32> to vector<16x1xf32>
    %39 = vector.extract_strided_slice %32 {offsets = [0, 6], sizes = [16, 1], strides = [1, 1]} : vector<16x8xf32> to vector<16x1xf32>
    %c0_11 = arith.constant 0 : index
    %c0_12 = arith.constant 0 : index
    %c0_13 = arith.constant 0 : index
    %40 = vector.load %arg1[%c0_11, %c0_12, %c0_13] : memref<1x16x256xf32, #tpu.memory_space<vmem>>, vector<1x16x256xf32>
    %41 = vector.shape_cast %40 : vector<1x16x256xf32> to vector<16x256xf32>
    %c0_14 = arith.constant 0 : index
    %c0_15 = arith.constant 0 : index
    %42 = vector.load %arg3[%c0_14, %c0_15] : memref<16x144xbf16, #tpu.memory_space<vmem>>, vector<16x144xbf16>
    %43 = arith.truncf %41 : vector<16x256xf32> to vector<16x256xbf16>
    %c0_16 = arith.constant 0 : index
    %c128 = arith.constant 128 : index
    %44 = vector.load %arg9[%c0_16, %c128] : memref<16x512xbf16, #tpu.memory_space<vmem>>, vector<16x256xbf16>
    tpu.vector_store %arg9[%c0_16, %c128], %43 {strides = array<i32>} : memref<16x512xbf16, #tpu.memory_space<vmem>>, vector<16x256xbf16>,
    %c0_17 = arith.constant 0 : index
    %c111 = arith.constant 111 : index
    %45 = vector.load %arg9[%c0_17, %c111] : memref<16x512xbf16, #tpu.memory_space<vmem>>, vector<16x256xbf16>
    %46 = vector.broadcast %25 : vector<1x256xbf16> to vector<16x256xbf16>
    %47 = arith.mulf %45, %46 : vector<16x256xbf16>
    %c0_18 = arith.constant 0 : index
    %c0_19 = arith.constant 0 : index
    %48 = vector.load %arg10[%c0_18, %c0_19] : memref<144x256xbf16, #tpu.memory_space<vmem>>, vector<16x256xbf16>
    tpu.vector_store %arg10[%c0_18, %c0_19], %47 {strides = array<i32>} : memref<144x256xbf16, #tpu.memory_space<vmem>>, vector<16x256xbf16>,
    %c0_20 = arith.constant 0 : index
    %c112 = arith.constant 112 : index
    %49 = vector.load %arg9[%c0_20, %c112] : memref<16x512xbf16, #tpu.memory_space<vmem>>, vector<16x256xbf16>
    %c16 = arith.constant 16 : index
    %c0_21 = arith.constant 0 : index
    %50 = vector.load %arg10[%c16, %c0_21] : memref<144x256xbf16, #tpu.memory_space<vmem>>, vector<16x256xbf16>
    tpu.vector_store %arg10[%c16, %c0_21], %49 {strides = array<i32>} : memref<144x256xbf16, #tpu.memory_space<vmem>>, vector<16x256xbf16>,
    %c0_22 = arith.constant 0 : index
    %c113 = arith.constant 113 : index
    %51 = vector.load %arg9[%c0_22, %c113] : memref<16x512xbf16, #tpu.memory_space<vmem>>, vector<16x256xbf16>
    %52 = vector.broadcast %30 : vector<1x256xbf16> to vector<16x256xbf16>
    %53 = arith.mulf %51, %52 : vector<16x256xbf16>
    %c32 = arith.constant 32 : index
    %c0_23 = arith.constant 0 : index
    %54 = vector.load %arg10[%c32, %c0_23] : memref<144x256xbf16, #tpu.memory_space<vmem>>, vector<16x256xbf16>
    tpu.vector_store %arg10[%c32, %c0_23], %53 {strides = array<i32>} : memref<144x256xbf16, #tpu.memory_space<vmem>>, vector<16x256xbf16>,
    %c0_24 = arith.constant 0 : index
    %c127 = arith.constant 127 : index
    %55 = vector.load %arg9[%c0_24, %c127] : memref<16x512xbf16, #tpu.memory_space<vmem>>, vector<16x256xbf16>
    %56 = vector.broadcast %25 : vector<1x256xbf16> to vector<16x256xbf16>
    %57 = arith.mulf %55, %56 : vector<16x256xbf16>
    %c48 = arith.constant 48 : index
    %c0_25 = arith.constant 0 : index
    %58 = vector.load %arg10[%c48, %c0_25] : memref<144x256xbf16, #tpu.memory_space<vmem>>, vector<16x256xbf16>
    tpu.vector_store %arg10[%c48, %c0_25], %57 {strides = array<i32>} : memref<144x256xbf16, #tpu.memory_space<vmem>>, vector<16x256xbf16>,
    %c0_26 = arith.constant 0 : index
    %c128_27 = arith.constant 128 : index
    %59 = vector.load %arg9[%c0_26, %c128_27] : memref<16x512xbf16, #tpu.memory_space<vmem>>, vector<16x256xbf16>
    %c64 = arith.constant 64 : index
    %c0_28 = arith.constant 0 : index
    %60 = vector.load %arg10[%c64, %c0_28] : memref<144x256xbf16, #tpu.memory_space<vmem>>, vector<16x256xbf16>
    tpu.vector_store %arg10[%c64, %c0_28], %59 {strides = array<i32>} : memref<144x256xbf16, #tpu.memory_space<vmem>>, vector<16x256xbf16>,
    %c0_29 = arith.constant 0 : index
    %c129 = arith.constant 129 : index
    %61 = vector.load %arg9[%c0_29, %c129] : memref<16x512xbf16, #tpu.memory_space<vmem>>, vector<16x256xbf16>
    %62 = vector.broadcast %30 : vector<1x256xbf16> to vector<16x256xbf16>
    %63 = arith.mulf %61, %62 : vector<16x256xbf16>
    %c80 = arith.constant 80 : index
    %c0_30 = arith.constant 0 : index
    %64 = vector.load %arg10[%c80, %c0_30] : memref<144x256xbf16, #tpu.memory_space<vmem>>, vector<16x256xbf16>
    tpu.vector_store %arg10[%c80, %c0_30], %63 {strides = array<i32>} : memref<144x256xbf16, #tpu.memory_space<vmem>>, vector<16x256xbf16>,
    %c0_31 = arith.constant 0 : index
    %c143 = arith.constant 143 : index
    %65 = vector.load %arg9[%c0_31, %c143] : memref<16x512xbf16, #tpu.memory_space<vmem>>, vector<16x256xbf16>
    %66 = vector.broadcast %25 : vector<1x256xbf16> to vector<16x256xbf16>
    %67 = arith.mulf %65, %66 : vector<16x256xbf16>
    %c96 = arith.constant 96 : index
    %c0_32 = arith.constant 0 : index
    %68 = vector.load %arg10[%c96, %c0_32] : memref<144x256xbf16, #tpu.memory_space<vmem>>, vector<16x256xbf16>
    tpu.vector_store %arg10[%c96, %c0_32], %67 {strides = array<i32>} : memref<144x256xbf16, #tpu.memory_space<vmem>>, vector<16x256xbf16>,
    %c0_33 = arith.constant 0 : index
    %c144 = arith.constant 144 : index
    %69 = vector.load %arg9[%c0_33, %c144] : memref<16x512xbf16, #tpu.memory_space<vmem>>, vector<16x256xbf16>
    %c112_34 = arith.constant 112 : index
    %c0_35 = arith.constant 0 : index
    %70 = vector.load %arg10[%c112_34, %c0_35] : memref<144x256xbf16, #tpu.memory_space<vmem>>, vector<16x256xbf16>
    tpu.vector_store %arg10[%c112_34, %c0_35], %69 {strides = array<i32>} : memref<144x256xbf16, #tpu.memory_space<vmem>>, vector<16x256xbf16>,
    %c0_36 = arith.constant 0 : index
    %c145 = arith.constant 145 : index
    %71 = vector.load %arg9[%c0_36, %c145] : memref<16x512xbf16, #tpu.memory_space<vmem>>, vector<16x256xbf16>
    %72 = vector.broadcast %30 : vector<1x256xbf16> to vector<16x256xbf16>
    %73 = arith.mulf %71, %72 : vector<16x256xbf16>
    %c128_37 = arith.constant 128 : index
    %c0_38 = arith.constant 0 : index
    %74 = vector.load %arg10[%c128_37, %c0_38] : memref<144x256xbf16, #tpu.memory_space<vmem>>, vector<16x256xbf16>
    tpu.vector_store %arg10[%c128_37, %c0_38], %73 {strides = array<i32>} : memref<144x256xbf16, #tpu.memory_space<vmem>>, vector<16x256xbf16>,
    %c0_39 = arith.constant 0 : index
    %c0_40 = arith.constant 0 : index
    %75 = vector.load %arg10[%c0_39, %c0_40] : memref<144x256xbf16, #tpu.memory_space<vmem>>, vector<144x256xbf16>
    %cst_41 = arith.constant dense<0.000000e+00> : vector<16x256xf32>
    %76 = tpu.matmul %42, %75, %cst_41 {dimension_numbers = #tpu.dot_dimension_numbers<[1], [0], [0], [1], [0, 0, 1, 1], [], []>} : vector<16x144xbf16>, vector<144x256xbf16>, vector<16x256xf32> -> vector<16x256xf32>
    %77 = vector.broadcast %33 : vector<16x1xf32> to vector<16x256xf32>
    %78 = arith.addf %76, %77 : vector<16x256xf32>
    %cst_42 = arith.constant dense<0.000000e+00> : vector<16xf32>
    %79 = vector.multi_reduction <add>, %78, %cst_42 [1] : vector<16x256xf32> to vector<16xf32>
    %80 = vector.shape_cast %79 : vector<16xf32> to vector<16x1xf32>
    %cst_43 = arith.constant dense<0.000000e+00> : vector<16x1xf32>
    %81 = tpu.matmul %31, %80, %cst_43 {dimension_numbers = #tpu.dot_dimension_numbers<[1], [0], [0], [1], [0, 0, 1, 1], [], []>, precision = #tpu.contract_precision<fp32>} : vector<16x16xf32>, vector<16x1xf32>, vector<16x1xf32> -> vector<16x1xf32>
    %82 = vector.broadcast %81 : vector<16x1xf32> to vector<16x256xf32>
    %83 = arith.subf %78, %82 : vector<16x256xf32>
    %84 = arith.mulf %83, %83 : vector<16x256xf32>
    %cst_44 = arith.constant dense<0.000000e+00> : vector<16xf32>
    %85 = vector.multi_reduction <add>, %84, %cst_44 [1] : vector<16x256xf32> to vector<16xf32>
    %86 = vector.shape_cast %85 : vector<16xf32> to vector<16x1xf32>
    %cst_45 = arith.constant dense<0.000000e+00> : vector<16x1xf32>
    %87 = tpu.matmul %31, %86, %cst_45 {dimension_numbers = #tpu.dot_dimension_numbers<[1], [0], [0], [1], [0, 0, 1, 1], [], []>, precision = #tpu.contract_precision<fp32>} : vector<16x16xf32>, vector<16x1xf32>, vector<16x1xf32> -> vector<16x1xf32>
    %cst_46 = arith.constant 9.99999974E-6 : f32
    %88 = vector.broadcast %cst_46 : f32 to vector<16x1xf32>
    %89 = arith.addf %87, %88 : vector<16x1xf32>
    %90 = math.rsqrt %89 : vector<16x1xf32>
    %91 = vector.broadcast %90 : vector<16x1xf32> to vector<16x256xf32>
    %92 = arith.mulf %83, %91 : vector<16x256xf32>
    %93 = vector.broadcast %34 : vector<16x1xf32> to vector<16x256xf32>
    %94 = arith.mulf %92, %93 : vector<16x256xf32>
    %95 = vector.broadcast %35 : vector<16x1xf32> to vector<16x256xf32>
    %96 = arith.addf %94, %95 : vector<16x256xf32>
    %c0_47 = arith.constant 0 : index
    %c0_48 = arith.constant 0 : index
    %c0_49 = arith.constant 0 : index
    %97 = vector.load %arg2[%c0_47, %c0_48, %c0_49] : memref<1x16x1xf32, #tpu.memory_space<vmem>>, vector<1x16x1xf32>
    %98 = vector.shape_cast %97 : vector<1x16x1xf32> to vector<16x1xf32>
    %99 = vector.broadcast %98 : vector<16x1xf32> to vector<16x256xf32>
    %100 = arith.addf %96, %99 : vector<16x256xf32>
    %101 = arith.negf %100 : vector<16x256xf32>
    %102 = math.exp %101 : vector<16x256xf32>
    %cst_50 = arith.constant 1.000000e+00 : f32
    %103 = vector.broadcast %cst_50 : f32 to vector<16x256xf32>
    %104 = arith.addf %103, %102 : vector<16x256xf32>
    %105 = arith.divf %103, %104 : vector<16x256xf32>
    %106 = arith.mulf %100, %105 : vector<16x256xf32>
    %c0_51 = arith.constant 0 : index
    %c0_52 = arith.constant 0 : index
    %107 = vector.load %arg4[%c0_51, %c0_52] : memref<16x144xbf16, #tpu.memory_space<vmem>>, vector<16x144xbf16>
    %108 = arith.truncf %106 : vector<16x256xf32> to vector<16x256xbf16>
    %c0_53 = arith.constant 0 : index
    %c128_54 = arith.constant 128 : index
    %109 = vector.load %arg9[%c0_53, %c128_54] : memref<16x512xbf16, #tpu.memory_space<vmem>>, vector<16x256xbf16>
    tpu.vector_store %arg9[%c0_53, %c128_54], %108 {strides = array<i32>} : memref<16x512xbf16, #tpu.memory_space<vmem>>, vector<16x256xbf16>,
    %c0_55 = arith.constant 0 : index
    %c111_56 = arith.constant 111 : index
    %110 = vector.load %arg9[%c0_55, %c111_56] : memref<16x512xbf16, #tpu.memory_space<vmem>>, vector<16x256xbf16>
    %111 = vector.broadcast %25 : vector<1x256xbf16> to vector<16x256xbf16>
    %112 = arith.mulf %110, %111 : vector<16x256xbf16>
    %c0_57 = arith.constant 0 : index
    %c0_58 = arith.constant 0 : index
    %113 = vector.load %arg10[%c0_57, %c0_58] : memref<144x256xbf16, #tpu.memory_space<vmem>>, vector<16x256xbf16>
    tpu.vector_store %arg10[%c0_57, %c0_58], %112 {strides = array<i32>} : memref<144x256xbf16, #tpu.memory_space<vmem>>, vector<16x256xbf16>,
    %c0_59 = arith.constant 0 : index
    %c112_60 = arith.constant 112 : index
    %114 = vector.load %arg9[%c0_59, %c112_60] : memref<16x512xbf16, #tpu.memory_space<vmem>>, vector<16x256xbf16>
    %c16_61 = arith.constant 16 : index
    %c0_62 = arith.constant 0 : index
    %115 = vector.load %arg10[%c16_61, %c0_62] : memref<144x256xbf16, #tpu.memory_space<vmem>>, vector<16x256xbf16>
    tpu.vector_store %arg10[%c16_61, %c0_62], %114 {strides = array<i32>} : memref<144x256xbf16, #tpu.memory_space<vmem>>, vector<16x256xbf16>,
    %c0_63 = arith.constant 0 : index
    %c113_64 = arith.constant 113 : index
    %116 = vector.load %arg9[%c0_63, %c113_64] : memref<16x512xbf16, #tpu.memory_space<vmem>>, vector<16x256xbf16>
    %117 = vector.broadcast %30 : vector<1x256xbf16> to vector<16x256xbf16>
    %118 = arith.mulf %116, %117 : vector<16x256xbf16>
    %c32_65 = arith.constant 32 : index
    %c0_66 = arith.constant 0 : index
    %119 = vector.load %arg10[%c32_65, %c0_66] : memref<144x256xbf16, #tpu.memory_space<vmem>>, vector<16x256xbf16>
    tpu.vector_store %arg10[%c32_65, %c0_66], %118 {strides = array<i32>} : memref<144x256xbf16, #tpu.memory_space<vmem>>, vector<16x256xbf16>,
    %c0_67 = arith.constant 0 : index
    %c127_68 = arith.constant 127 : index
    %120 = vector.load %arg9[%c0_67, %c127_68] : memref<16x512xbf16, #tpu.memory_space<vmem>>, vector<16x256xbf16>
    %121 = vector.broadcast %25 : vector<1x256xbf16> to vector<16x256xbf16>
    %122 = arith.mulf %120, %121 : vector<16x256xbf16>
    %c48_69 = arith.constant 48 : index
    %c0_70 = arith.constant 0 : index
    %123 = vector.load %arg10[%c48_69, %c0_70] : memref<144x256xbf16, #tpu.memory_space<vmem>>, vector<16x256xbf16>
    tpu.vector_store %arg10[%c48_69, %c0_70], %122 {strides = array<i32>} : memref<144x256xbf16, #tpu.memory_space<vmem>>, vector<16x256xbf16>,
    %c0_71 = arith.constant 0 : index
    %c128_72 = arith.constant 128 : index
    %124 = vector.load %arg9[%c0_71, %c128_72] : memref<16x512xbf16, #tpu.memory_space<vmem>>, vector<16x256xbf16>
    %c64_73 = arith.constant 64 : index
    %c0_74 = arith.constant 0 : index
    %125 = vector.load %arg10[%c64_73, %c0_74] : memref<144x256xbf16, #tpu.memory_space<vmem>>, vector<16x256xbf16>
    tpu.vector_store %arg10[%c64_73, %c0_74], %124 {strides = array<i32>} : memref<144x256xbf16, #tpu.memory_space<vmem>>, vector<16x256xbf16>,
    %c0_75 = arith.constant 0 : index
    %c129_76 = arith.constant 129 : index
    %126 = vector.load %arg9[%c0_75, %c129_76] : memref<16x512xbf16, #tpu.memory_space<vmem>>, vector<16x256xbf16>
    %127 = vector.broadcast %30 : vector<1x256xbf16> to vector<16x256xbf16>
    %128 = arith.mulf %126, %127 : vector<16x256xbf16>
    %c80_77 = arith.constant 80 : index
    %c0_78 = arith.constant 0 : index
    %129 = vector.load %arg10[%c80_77, %c0_78] : memref<144x256xbf16, #tpu.memory_space<vmem>>, vector<16x256xbf16>
    tpu.vector_store %arg10[%c80_77, %c0_78], %128 {strides = array<i32>} : memref<144x256xbf16, #tpu.memory_space<vmem>>, vector<16x256xbf16>,
    %c0_79 = arith.constant 0 : index
    %c143_80 = arith.constant 143 : index
    %130 = vector.load %arg9[%c0_79, %c143_80] : memref<16x512xbf16, #tpu.memory_space<vmem>>, vector<16x256xbf16>
    %131 = vector.broadcast %25 : vector<1x256xbf16> to vector<16x256xbf16>
    %132 = arith.mulf %130, %131 : vector<16x256xbf16>
    %c96_81 = arith.constant 96 : index
    %c0_82 = arith.constant 0 : index
    %133 = vector.load %arg10[%c96_81, %c0_82] : memref<144x256xbf16, #tpu.memory_space<vmem>>, vector<16x256xbf16>
    tpu.vector_store %arg10[%c96_81, %c0_82], %132 {strides = array<i32>} : memref<144x256xbf16, #tpu.memory_space<vmem>>, vector<16x256xbf16>,
    %c0_83 = arith.constant 0 : index
    %c144_84 = arith.constant 144 : index
    %134 = vector.load %arg9[%c0_83, %c144_84] : memref<16x512xbf16, #tpu.memory_space<vmem>>, vector<16x256xbf16>
    %c112_85 = arith.constant 112 : index
    %c0_86 = arith.constant 0 : index
    %135 = vector.load %arg10[%c112_85, %c0_86] : memref<144x256xbf16, #tpu.memory_space<vmem>>, vector<16x256xbf16>
    tpu.vector_store %arg10[%c112_85, %c0_86], %134 {strides = array<i32>} : memref<144x256xbf16, #tpu.memory_space<vmem>>, vector<16x256xbf16>,
    %c0_87 = arith.constant 0 : index
    %c145_88 = arith.constant 145 : index
    %136 = vector.load %arg9[%c0_87, %c145_88] : memref<16x512xbf16, #tpu.memory_space<vmem>>, vector<16x256xbf16>
    %137 = vector.broadcast %30 : vector<1x256xbf16> to vector<16x256xbf16>
    %138 = arith.mulf %136, %137 : vector<16x256xbf16>
    %c128_89 = arith.constant 128 : index
    %c0_90 = arith.constant 0 : index
    %139 = vector.load %arg10[%c128_89, %c0_90] : memref<144x256xbf16, #tpu.memory_space<vmem>>, vector<16x256xbf16>
    tpu.vector_store %arg10[%c128_89, %c0_90], %138 {strides = array<i32>} : memref<144x256xbf16, #tpu.memory_space<vmem>>, vector<16x256xbf16>,
    %c0_91 = arith.constant 0 : index
    %c0_92 = arith.constant 0 : index
    %140 = vector.load %arg10[%c0_91, %c0_92] : memref<144x256xbf16, #tpu.memory_space<vmem>>, vector<144x256xbf16>
    %cst_93 = arith.constant dense<0.000000e+00> : vector<16x256xf32>
    %141 = tpu.matmul %107, %140, %cst_93 {dimension_numbers = #tpu.dot_dimension_numbers<[1], [0], [0], [1], [0, 0, 1, 1], [], []>} : vector<16x144xbf16>, vector<144x256xbf16>, vector<16x256xf32> -> vector<16x256xf32>
    %142 = vector.broadcast %36 : vector<16x1xf32> to vector<16x256xf32>
    %143 = arith.addf %141, %142 : vector<16x256xf32>
    %cst_94 = arith.constant dense<0.000000e+00> : vector<16xf32>
    %144 = vector.multi_reduction <add>, %143, %cst_94 [1] : vector<16x256xf32> to vector<16xf32>
    %145 = vector.shape_cast %144 : vector<16xf32> to vector<16x1xf32>
    %cst_95 = arith.constant dense<0.000000e+00> : vector<16x1xf32>
    %146 = tpu.matmul %31, %145, %cst_95 {dimension_numbers = #tpu.dot_dimension_numbers<[1], [0], [0], [1], [0, 0, 1, 1], [], []>, precision = #tpu.contract_precision<fp32>} : vector<16x16xf32>, vector<16x1xf32>, vector<16x1xf32> -> vector<16x1xf32>
    %147 = vector.broadcast %146 : vector<16x1xf32> to vector<16x256xf32>
    %148 = arith.subf %143, %147 : vector<16x256xf32>
    %149 = arith.mulf %148, %148 : vector<16x256xf32>
    %cst_96 = arith.constant dense<0.000000e+00> : vector<16xf32>
    %150 = vector.multi_reduction <add>, %149, %cst_96 [1] : vector<16x256xf32> to vector<16xf32>
    %151 = vector.shape_cast %150 : vector<16xf32> to vector<16x1xf32>
    %cst_97 = arith.constant dense<0.000000e+00> : vector<16x1xf32>
    %152 = tpu.matmul %31, %151, %cst_97 {dimension_numbers = #tpu.dot_dimension_numbers<[1], [0], [0], [1], [0, 0, 1, 1], [], []>, precision = #tpu.contract_precision<fp32>} : vector<16x16xf32>, vector<16x1xf32>, vector<16x1xf32> -> vector<16x1xf32>
    %cst_98 = arith.constant 9.99999974E-6 : f32
    %153 = vector.broadcast %cst_98 : f32 to vector<16x1xf32>
    %154 = arith.addf %152, %153 : vector<16x1xf32>
    %155 = math.rsqrt %154 : vector<16x1xf32>
    %156 = vector.broadcast %155 : vector<16x1xf32> to vector<16x256xf32>
    %157 = arith.mulf %148, %156 : vector<16x256xf32>
    %158 = vector.broadcast %37 : vector<16x1xf32> to vector<16x256xf32>
    %159 = arith.mulf %157, %158 : vector<16x256xf32>
    %160 = vector.broadcast %38 : vector<16x1xf32> to vector<16x256xf32>
    %161 = arith.addf %159, %160 : vector<16x256xf32>
    %162 = arith.negf %161 : vector<16x256xf32>
    %163 = math.exp %162 : vector<16x256xf32>
    %cst_99 = arith.constant 1.000000e+00 : f32
    %164 = vector.broadcast %cst_99 : f32 to vector<16x256xf32>
    %165 = arith.addf %164, %163 : vector<16x256xf32>
    %166 = arith.divf %164, %165 : vector<16x256xf32>
    %167 = arith.mulf %161, %166 : vector<16x256xf32>
    %c0_100 = arith.constant 0 : index
    %c0_101 = arith.constant 0 : index
    %168 = vector.load %arg5[%c0_100, %c0_101] : memref<16x16xbf16, #tpu.memory_space<vmem>>, vector<16x16xbf16>
    %169 = arith.truncf %41 : vector<16x256xf32> to vector<16x256xbf16>
    %cst_102 = arith.constant dense<0.000000e+00> : vector<16x256xf32>
    %170 = tpu.matmul %168, %169, %cst_102 {dimension_numbers = #tpu.dot_dimension_numbers<[1], [0], [0], [1], [0, 0, 1, 1], [], []>} : vector<16x16xbf16>, vector<16x256xbf16>, vector<16x256xf32> -> vector<16x256xf32>
    %171 = vector.broadcast %39 : vector<16x1xf32> to vector<16x256xf32>
    %172 = arith.addf %170, %171 : vector<16x256xf32>
    %173 = arith.addf %167, %172 : vector<16x256xf32>
    %c0_103 = arith.constant 0 : index
    %c0_104 = arith.constant 0 : index
    %c0_105 = arith.constant 0 : index
    %174 = vector.load %arg8[%c0_103, %c0_104, %c0_105] : memref<1x16x256xf32, #tpu.memory_space<vmem>>, vector<1x16x256xf32>
    %175 = vector.shape_cast %174 : vector<1x16x256xf32> to vector<16x256xf32>
    %176 = vector.shape_cast %173 : vector<16x256xf32> to vector<1x16x256xf32>
    tpu.vector_store %arg8[%c0_103, %c0_104, %c0_105], %176 {strides = array<i32>} : memref<1x16x256xf32, #tpu.memory_space<vmem>>, vector<1x16x256xf32>,
    return
  }
  func.func @transform_0(%arg0: i32) -> (i32, i32, i32) {
    %c0_i32 = arith.constant 0 : i32
    %c0_i32_0 = arith.constant 0 : i32
    %c0_i32_1 = arith.constant 0 : i32
    return %arg0, %c0_i32, %c0_i32_0 : i32, i32, i32
  }
  func.func @transform_1(%arg0: i32) -> (i32, i32, i32) {
    %c0_i32 = arith.constant 0 : i32
    %c0_i32_0 = arith.constant 0 : i32
    %c0_i32_1 = arith.constant 0 : i32
    return %arg0, %c0_i32, %c0_i32_0 : i32, i32, i32
  }
  func.func @transform_2(%arg0: i32) -> (i32, i32) {
    %c0_i32 = arith.constant 0 : i32
    %c0_i32_0 = arith.constant 0 : i32
    %c0_i32_1 = arith.constant 0 : i32
    return %c0_i32, %c0_i32_0 : i32, i32
  }
  func.func @transform_3(%arg0: i32) -> (i32, i32) {
    %c0_i32 = arith.constant 0 : i32
    %c0_i32_0 = arith.constant 0 : i32
    %c0_i32_1 = arith.constant 0 : i32
    return %c0_i32, %c0_i32_0 : i32, i32
  }
  func.func @transform_4(%arg0: i32) -> (i32, i32) {
    %c0_i32 = arith.constant 0 : i32
    %c0_i32_0 = arith.constant 0 : i32
    %c0_i32_1 = arith.constant 0 : i32
    return %c0_i32, %c0_i32_0 : i32, i32
  }
  func.func @transform_5(%arg0: i32) -> (i32, i32) {
    %c0_i32 = arith.constant 0 : i32
    %c0_i32_0 = arith.constant 0 : i32
    %c0_i32_1 = arith.constant 0 : i32
    return %c0_i32, %c0_i32_0 : i32, i32
  }
  func.func @transform_6(%arg0: i32) -> (i32, i32) {
    %c0_i32 = arith.constant 0 : i32
    %c0_i32_0 = arith.constant 0 : i32
    %c0_i32_1 = arith.constant 0 : i32
    return %c0_i32, %c0_i32_0 : i32, i32
  }
  func.func @transform_7(%arg0: i32) -> (i32, i32, i32) {
    %c0_i32 = arith.constant 0 : i32
    %c0_i32_0 = arith.constant 0 : i32
    %c0_i32_1 = arith.constant 0 : i32
    return %arg0, %c0_i32, %c0_i32_0 : i32, i32, i32
  }
}

</mosaic_0001>

<bundles_post_ra>
// kernel: conv_block.1
= control target key start
LH: loop header
LB: loop body
LE: loop exit
PB: predicated region body
PF: predicated region fallthrough
CT: control target
= control target key end

     0   :  { %s4175_s24 = smov 0   ;;  %s4743_s0 = inlined_call_operand.vmem [shape: f32[2,16,256], index: 0, kind: input, shape index: {}]   ;;  %s4744_s1 = inlined_call_operand.vmem [shape: f32[2,16,1], index: 1, kind: input, shape index: {}]   ;;  %s4745_s2 = inlined_call_operand.vmem [shape: bf16[16,144], index: 2, kind: input, shape index: {}]   ;;  %s4746_s3 = inlined_call_operand.vmem [shape: bf16[16,144], index: 3, kind: input, shape index: {}]   ;;  %s4747_s4 = inlined_call_operand.vmem [shape: bf16[16,16], index: 4, kind: input, shape index: {}]   ;;  %s4748_s5 = inlined_call_operand.vmem [shape: f32[16,8], index: 5, kind: input, shape index: {}]   ;;  %s4749_s6 = inlined_call_operand.vmem [shape: f32[16,16], index: 6, kind: input, shape index: {}]   ;;  %s4750_s7 = inlined_call_operand.vmem [shape: f32[2,16,256], index: 7, kind: output, shape index: {}]  }
   0x1 LB: > { %s3653_s25 = sadd.s32 4294967295, %s4117_s24   ;;  %p3657_p0 = scmp.ge.s32.totalorder %s4117_s24, 1  ;;  %s4117_s24 = sphi %s4175_s24, %s17_s24  }
   0x2   : > { %p247_p1 = scmp.lt.s32.totalorder %s4117_s24, 3 }
   0x4   : > { %p248_p2 = pnand %p3657_p0, %p247_p1 }
   0x5   : > { %p284_p3 = scmp.lt.s32.totalorder (!%p248_p2), %s3653_s25, 1  ;;  %s4121_s30 = smov (!%p248_p2), 15  }
   0x6   : > { %251 = sbr.rel (%p248_p2) target bundleno = 2990 (0xbae), region = 48  ;;  %s4122_s8 = smov (!%p248_p2), 127  }
   0x7   : > { %s4123_s9 = smov (!%p248_p2), 1   ;;  %s4124_s10 = smov (!%p248_p2), 113  }
   0x8   : > { %s4125_s11 = smov (!%p248_p2), 111   ;;  %s4126_s12 = smov (!%p248_p2), 17  }
   0x9   : > { %s4127_s13 = smov (!%p248_p2), 112   ;;  %s4128_s14 = smov (!%p248_p2), 16  }
   0xb   : > { %v304_v0 = vlaneseq  ;;  %v4119_v1 = vmov 0   ;;  %s4752_s25 = smov (!%p284_p3, %s3653_s25), 1  ;;  %v4120_v6 = vmov 0.0   ;;  %vm483_vm4 = vcmask 121856  }
   0xc   : > { %302 = vst [vmem:[#allocation2 + $0xc] sm:$0xf] %v4119_v1  ;;  %303 = vst [vmem:[#allocation2 + $0x1c] sm:$0xf] %v4119_v1  ;;  %4031 = vset.pattern.permute.xlu0 %v4119_v1  ;;  %4030 = vset.pattern.permute.xlu1 %v4119_v1  ;;  %s3728_s26 = sshll.u32 %s4752_s25, 5  ;;  %vm523_vm5 = vcmask 7168  }
   0xd   : > { %300 = vst [vmem:[#allocation2] sm:$0xf] %v4119_v1  ;;  %301 = vst [vmem:[#allocation2 + $0x10] sm:$0xf] %v4119_v1  ;;  %v305_v2 = vand.u32 127, %v304_v0  ;;  %s4197_s29 = scalar_lea.vmem %s4743_s0, %s3728_s26  ;;  %vm498_vm6 = vcmask 1039360   ;;  %s298_s23 = scalar_lea.vmem %s4750_s7, %s3728_s26 }
   0xe   : > { %v4200_v11 = vld [vmem:[%s4197_s29] sm:$0xff]  ;;  %v4203_v12 = vld [vmem:[%s4197_s29 + $0x8] sm:$0xff]  ;;  %v4206_v13 = vld [vmem:[%s4197_s29 + $0x10] sm:$0xff]  ;;  %vm407_vm7 = vcmask 1043456   ;;  %vm632_vm8 = vcmask 916480   ;;  %vm458_vm9 = vcmask 924672  }
   0xf   : > { %v306_v3 = vadd.s32 128, %v305_v2  ;;  %v311_v4 = vand.u32 15, %v305_v2  ;;  %v4210_v15 = vpack.c.bf16 %v4203_v12, %v4200_v11  ;;  %v4213_v16 = vld [vmem:[%s4197_s29 + $0x18] sm:$0xff]  ;;  %vm383_vm10 = vcmask 908288   ;;  %s3729_s16 = sshll.u32 %s4752_s25, 4 }
  0x10   : > { %v4217_v17 = vpack.c.bf16 %v4213_v16, %v4206_v13  ;;  %vm409_vm11 = vcmask 138240   ;;  %vm438_vm12 = vcmask 130048   ;;  %s293_s19 = scalar_lea.vmem %s4744_s1, %s3729_s16 }
  0x11   : > { %v318_v5 = vand.u32 15, %v306_v3  ;;  %vm331_vm0 = vcmp.ge.s32.totalorder %v311_v4, 1  ;;  %vm339_vm1 = vcmp.le.s32.totalorder %v311_v4, 14  ;;  %369 = vst [vmem:[#allocation2 + $0x4] sm:$0xff] %v4210_v15 }
  0x12   : > { %v3664_v7 = vsel %vm331_vm0, 1.0, %v4120_v6  ;;  %v3666_v9 = vsel %vm339_vm1, 1.0, %v4120_v6  ;;  %370 = vst [vmem:[#allocation2 + $0x14] sm:$0xff] %v4217_v17 }
  0x13   : > { %vm332_vm2 = vcmp.ge.s32.totalorder %v318_v5, 1  ;;  %vm340_vm3 = vcmp.le.s32.totalorder %v318_v5, 14  ;;  %v612_v19 = vld [vmem:[#allocation2 + $0xc] sm:$0xf]  ;;  %v614_v20 = vld [vmem:[#allocation2 + $0x1c] sm:$0xf] }
  0x14   : > { %v3665_v8 = vsel %vm332_vm2, 1.0, %v4120_v6  ;;  %v3667_v10 = vsel %vm340_vm3, 1.0, %v4120_v6  ;;  %v4025_v21 = vpack.i.bf16 %v614_v20, %v612_v19  ;;  %v574_v27 = vld [vmem:[#allocation2 + $0xc] sm:$0xf]  ;;  %v576_v34 = vld [vmem:[#allocation2 + $0x1c] sm:$0xf] }
  0x15   : > { %v3733_v14 = vpack.c.bf16 %v3665_v8, %v3664_v7  ;;  %v3734_v18 = vpack.c.bf16 %v3667_v10, %v3666_v9  ;;  %v536_v37 = vld [vmem:[#allocation2 + $0xc] sm:$0xf]  ;;  %v538_v45 = vld [vmem:[#allocation2 + $0x1c] sm:$0xf] }
  0x17   : > { %577 = vrot.lane.b32.xlu0 %v3733_v14, %s4121_s30  ;;  %495 = vrot.lane.b32.xlu1 %v3733_v14, %s4122_s8 }
  0x18   : > { %v4230_v22 = vld [vmem:[#allocation2] sm:$0xff]  ;;  %v418_v23 = vld [vmem:[#allocation2 + $0x8] sm:$0xf] }
  0x19   : > { %v4236_v24 = vld [vmem:[#allocation2 + $0x10] sm:$0xff]  ;;  %v420_v25 = vld [vmem:[#allocation2 + $0x18] sm:$0xf]  ;;  %v492_v50 = vld [vmem:[#allocation2 + $0x8] sm:$0xf] }
  0x1a   : > { %v494_v2 = vld [vmem:[#allocation2 + $0x18] sm:$0xf]  ;;  %v447_v7 = vld [vmem:[#allocation2 + $0x8] sm:$0xf] }
  0x1b   : > { %539 = vrot.lane.b32.xlu0 %v3734_v18, %s4123_s9  ;;  %455 = vrot.lane.b32.xlu1 %v3734_v18, %s4124_s10  ;;  %v449_v19 = vld [vmem:[#allocation2 + $0x18] sm:$0xf] }
  0x1f   : > { %380 = vrot.lane.b32.xlu0 %v3733_v14, %s4125_s11  ;;  %644 = vrot.lane.b32.xlu1 %v3734_v18, %s4126_s12 }
  0x23   : > { %619 = vrot.lane.b32.xlu0 %v4210_v15, %s4127_s13  ;;  %4026 = vrot.lane.b32.xlu1 %v4025_v21, %s4127_s13  ;;  %v372_v21 = vld [vmem:[#allocation2 + $0x8] sm:$0xf] }
  0x27   : > { %623 = vrot.lane.b32.xlu0 %v4217_v17, %s4127_s13  ;;  %425 = vrot.lane.b32.xlu1 %v4230_v22, %s4128_s14 }
  0x2b   : > { %427 = vrot.lane.b32.xlu0 %v418_v23, %s4128_s14  ;;  %429 = vrot.lane.b32.xlu1 %v4236_v24, %s4128_s14 }
  0x2f   : > { %431 = vrot.lane.b32.xlu0 %v420_v25, %s4128_s14 }
  0x89   : > { %v578_v26 = vpop.permute.xlu0 %577  ;;  %v496_v28 = vpop.permute.xlu1 %495 }
  0x8a   : > { %v4242_v29 = vrot.slane %v578_v26, 4  ;;  %v4270_v48 = vrot.slane %v496_v28, 4 }
  0x8c   : > { %v4246_v30 = vsel %vm483_vm4, %v4242_v29, %v578_v26  ;;  %v584_v31 = vmul.bf16 %v4242_v29, %v574_v27  ;;  %v586_v38 = vmul.bf16 %v4242_v29, %v576_v34  ;;  %v4278_v58 = vsel %vm498_vm6, %v4270_v48, %v496_v28 }
  0x8d   : > { %v540_v32 = vpop.permute.xlu0 %539  ;;  %v583_v33 = vmul.bf16 %v4210_v15, %v4246_v30  ;;  %v456_v35 = vpop.permute.xlu1 %455  ;;  %v585_v39 = vmul.bf16 %v4217_v17, %v4246_v30  ;;  %v503_v59 = vmul.bf16 %v4270_v48, %v492_v50  ;;  %v502_v0 = vmul.bf16 %v4278_v58, %v4230_v22 }
  0x8e   : > { %593 = vrot.lane.b32.xlu0 %v584_v31, %s4124_s10  ;;  %v4252_v36 = vrot.slane %v540_v32, 4  ;;  %v4290_v4 = vrot.slane %v456_v35, 4  ;;  %v505_v8 = vmul.bf16 %v4270_v48, %v494_v2  ;;  %v504_v9 = vmul.bf16 %v4278_v58, %v4236_v24  ;;  %v374_v31 = vld [vmem:[#allocation2 + $0x18] sm:$0xf] }
  0x8f   : > { %591 = vrot.lane.b32.xlu1 %v583_v33, %s4124_s10  ;;  %v641_v33 = vld [vmem:[#allocation2 + $0xc] sm:$0xf] }
  0x90   : > { %v4262_v42 = vsel %vm523_vm5, %v4252_v36, %v540_v32  ;;  %v546_v43 = vmul.bf16 %v4252_v36, %v536_v37  ;;  %v548_v53 = vmul.bf16 %v4252_v36, %v538_v45  ;;  %v4298_v10 = vsel %vm458_vm9, %v4290_v4, %v456_v35 }
  0x91   : > { %v381_v40 = vpop.permute.xlu0 %380  ;;  %v4258_v41 = vpop.permute.xlu1 %644  ;;  %v545_v44 = vmul.bf16 %v4210_v15, %v4262_v42  ;;  %v547_v55 = vmul.bf16 %v4217_v17, %v4262_v42  ;;  %v463_v14 = vmul.bf16 %v4290_v4, %v447_v7  ;;  %v462_v18 = vmul.bf16 %v4298_v10, %v4230_v22 }
  0x92   : > { %597 = vrot.lane.b32.xlu0 %v586_v38, %s4124_s10  ;;  %v4306_v20 = vrot.slane %v381_v40, 4  ;;  %v465_v23 = vmul.bf16 %v4290_v4, %v449_v19  ;;  %v464_v25 = vmul.bf16 %v4298_v10, %v4236_v24  ;;  %v4323_v32 = vrot.slane %v4258_v41, 4 }
  0x93   : > { %595 = vrot.lane.b32.xlu1 %v585_v39, %s4124_s10  ;;  %v643_v39 = vld [vmem:[#allocation2 + $0x1c] sm:$0xf] }
  0x94   : > { %v4314_v26 = vsel %vm383_vm10, %v4306_v20, %v381_v40  ;;  %v388_v27 = vmul.bf16 %v4306_v20, %v372_v21  ;;  %v390_v34 = vmul.bf16 %v4306_v20, %v374_v31  ;;  %v4332_v37 = vsel %vm409_vm11, %v4323_v32, %v4258_v41  ;;  %v4056_v40 = vld [vmem:[%s4745_s2 + $0x4] ss:$8 sps:$4 sm:$0xff]  }
  0x95   : > { %v620_v46 = vpop.permute.xlu0 %619  ;;  %v4027_v47 = vpop.permute.xlu1 %4026  ;;  %v387_v28 = vmul.bf16 %v4230_v22, %v4314_v26  ;;  %v389_v35 = vmul.bf16 %v4236_v24, %v4314_v26  ;;  %v651_v22 = vmul.bf16 %v4323_v32, %v641_v33  ;;  %v650_v38 = vmul.bf16 %v4210_v15, %v4332_v37  ;;  %3692 = vmatprep.mubr.msk.bf16.mxu0 %vm438_vm12, %v4056_v40  ;;  %v4353_v15 = vld [vmem:[%s4748_s5] sm:$0xff] }
  0x96   : > { %555 = vrot.lane.b32.xlu0 %v546_v43, %s4122_s8  ;;  %v4029_v49 = vunpack.i.h.bf16 %v4027_v47  ;;  %v627_v51 = vrot.slane %v620_v46, 4  ;;  %v4028_v52 = vunpack.i.l.bf16 %v4027_v47  ;;  %v653_v24 = vmul.bf16 %v4323_v32, %v643_v39  ;;  %v4358_v43 = vld [vmem:[%s4748_s5 + $0x8] sm:$0xff] }
  0x97   : > { %553 = vrot.lane.b32.xlu1 %v545_v44, %s4122_s8  ;;  %v652_v41 = vmul.bf16 %v4217_v17, %v4332_v37 }
  0x98   : > { %v630_v54 = vrot.slane %v4029_v49, 4  ;;  %v628_v56 = vrot.slane %v4028_v52, 4 }
  0x99   : > { %v624_v57 = vpop.permute.xlu0 %623  ;;  %v4364_v17 = vpop.permute.xlu1 %425 }
  0x9a   : > { %559 = vrot.lane.b32.xlu0 %v548_v53, %s4122_s8  ;;  %v629_v60 = vrot.slane %v624_v57, 4  ;;  %v631_v61 = vsel %vm407_vm7, %v627_v51, %v628_v56 }
  0x9b   : > { %557 = vrot.lane.b32.xlu1 %v547_v55, %s4122_s8  ;;  %v633_v62 = vsel %vm632_vm8, %v620_v46, %v631_v61 }
  0x9c   : > { %v634_v63 = vsel %vm407_vm7, %v629_v60, %v630_v54 }
  0x9d   : > { %v635_v3 = vsel %vm632_vm8, %v624_v57, %v634_v63  ;;  %v4362_v44 = vpop.permute.xlu0 %427  ;;  %v4368_v46 = vpop.permute.xlu1 %429 }
  0x9e   : > { %512 = vrot.lane.b32.xlu0 %v503_v59, %s4123_s9  ;;  %v3689_v5 = vcombine.high %v633_v62, %v635_v3  ;;  %v3688_v6 = vcombine.low %v633_v62, %v635_v3 }
  0x9f   : > { %510 = vrot.lane.b32.xlu1 %v502_v0, %s4123_s9 }
  0xa0   : > { %809 = vmatprep.subr.bf16.mxu0 %v3689_v5 }
  0xa1   : > { %810 = vmatpush1.bf16.msra.mxu0 %v3688_v6  ;;  %v4366_v45 = vpop.permute.xlu0 %431 }
  0xa2   : > { %516 = vrot.lane.b32.xlu0 %v505_v8, %s4123_s9 }
  0xa3   : > { %514 = vrot.lane.b32.xlu1 %v504_v9, %s4123_s9 }
  0xa6   : > { %472 = vrot.lane.b32.xlu0 %v463_v14, %s4121_s30 }
  0xa7   : > { %470 = vrot.lane.b32.xlu1 %v462_v18, %s4121_s30 }
  0xaa   : > { %476 = vrot.lane.b32.xlu0 %v465_v23, %s4121_s30 }
  0xab   : > { %474 = vrot.lane.b32.xlu1 %v464_v25, %s4121_s30  ;;  %v4107_v25 = vpack.c.bf16 %v4213_v16, %v4203_v12  ;;  %v433_v12 = vrot.slane %v4364_v17, 4 }
  0xae   : > { %397 = vrot.lane.b32.xlu0 %v388_v27, %s4126_s12 }
  0xaf   : > { %395 = vrot.lane.b32.xlu1 %v387_v28, %s4126_s12 }
  0xb2   : > { %401 = vrot.lane.b32.xlu0 %v390_v34, %s4126_s12 }
  0xb3   : > { %399 = vrot.lane.b32.xlu1 %v389_v35, %s4126_s12 }
  0xb6   : > { %660 = vrot.lane.b32.xlu0 %v651_v22, %s4125_s11 }
  0xb7   : > { %658 = vrot.lane.b32.xlu1 %v650_v38, %s4125_s11  ;;  %v4108_v38 = vpack.c.bf16 %v4206_v13, %v4200_v11 }
  0xba   : > { %664 = vrot.lane.b32.xlu0 %v653_v24, %s4125_s11  ;;  %v434_v24 = vrot.slane %v4362_v44, 4 }
  0xbb   : > { %662 = vrot.lane.b32.xlu1 %v652_v41, %s4125_s11 }
  0xbe   : > { %698 = vperm.xlu0 %4031, %v4353_v15  }
  0xbf   : > { %703 = vperm.xlu1 %4030, %v4358_v43  }
 0x100   : > { %v594_v47 = vpop.permute.xlu0 %593 }
 0x101   : > { %v592_v49 = vpop.permute.xlu1 %591  ;;  %v600_v50 = vrot.slane %v594_v47, 4  ;;  %v436_v47 = vrot.slane %v4366_v45, 4 }
 0x102   : > { %v599_v51 = vrot.slane %v592_v49, 4 }
 0x104   : > { %v598_v52 = vpop.permute.xlu0 %597  ;;  %v603_v55 = vsel %vm407_vm7, %v599_v51, %v600_v50 }
 0x105   : > { %v602_v53 = vrot.slane %v598_v52, 4  ;;  %v596_v54 = vpop.permute.xlu1 %595  ;;  %v604_v60 = vsel %vm458_vm9, %v592_v49, %v603_v55  ;;  %v435_v49 = vrot.slane %v4368_v46, 4 }
 0x106   : > { %v601_v56 = vrot.slane %v596_v54, 4 }
 0x107   : > { %v440_v45 = vsel %vm407_vm7, %v435_v49, %v436_v47 }
 0x108   : > { %v605_v57 = vsel %vm407_vm7, %v601_v56, %v602_v53  ;;  %v556_v59 = vpop.permute.xlu0 %555 }
 0x109   : > { %v606_v61 = vsel %vm458_vm9, %v596_v54, %v605_v57  ;;  %v554_v62 = vpop.permute.xlu1 %553  ;;  %v562_v2 = vrot.slane %v556_v59, 4  ;;  %v437_v57 = vsel %vm407_vm7, %v433_v12, %v434_v24 }
 0x10a   : > { %v3686_v63 = vcombine.low %v604_v60, %v606_v61  ;;  %v3687_v0 = vcombine.high %v604_v60, %v606_v61  ;;  %v561_v3 = vrot.slane %v554_v62, 4 }
 0x10c   : > { %v560_v5 = vpop.permute.xlu0 %559  ;;  %811 = vmatprep.subr.bf16.mxu0 %v3687_v0  ;;  %v565_v8 = vsel %vm407_vm7, %v561_v3, %v562_v2  ;;  %v441_v0 = vsel %vm438_vm12, %v4368_v46, %v440_v45 }
 0x10d   : > { %v564_v6 = vrot.slane %v560_v5, 4  ;;  %812 = vmatpush1.bf16.msra.mxu0 %v3686_v63  ;;  %v558_v7 = vpop.permute.xlu1 %557  ;;  %v566_v19 = vsel %vm498_vm6, %v554_v62, %v565_v8  ;;  %v439_v63 = vsel %vm438_vm12, %v4364_v17, %v437_v57 }
 0x10e   : > { %v563_v9 = vrot.slane %v558_v7, 4  ;;  %v3676_v46 = vcombine.low %v439_v63, %v441_v0 }
 0x110   : > { %v567_v14 = vsel %vm407_vm7, %v563_v9, %v564_v6  ;;  %v513_v18 = vpop.permute.xlu0 %512 }
 0x111   : > { %v568_v21 = vsel %vm498_vm6, %v558_v7, %v567_v14  ;;  %v511_v23 = vpop.permute.xlu1 %510  ;;  %v519_v31 = vrot.slane %v513_v18, 4  ;;  %v3677_v14 = vcombine.high %v439_v63, %v441_v0 }
 0x112   : > { %v3684_v27 = vcombine.low %v566_v19, %v568_v21  ;;  %v3685_v28 = vcombine.high %v566_v19, %v568_v21  ;;  %v518_v33 = vrot.slane %v511_v23, 4 }
 0x114   : > { %v517_v34 = vpop.permute.xlu0 %516  ;;  %813 = vmatprep.subr.bf16.mxu0 %v3685_v28  ;;  %v522_v39 = vsel %vm407_vm7, %v518_v33, %v519_v31 }
 0x115   : > { %v521_v35 = vrot.slane %v517_v34, 4  ;;  %814 = vmatpush1.bf16.msra.mxu0 %v3684_v27  ;;  %v515_v22 = vpop.permute.xlu1 %514  ;;  %v524_v50 = vsel %vm523_vm5, %v511_v23, %v522_v39 }
 0x116   : > { %v520_v40 = vrot.slane %v515_v22, 4  ;;  %815 = vmatprep.subr.bf16.mxu0 %v4107_v25 }
 0x118   : > { %v525_v16 = vsel %vm407_vm7, %v520_v40, %v521_v35  ;;  %v473_v41 = vpop.permute.xlu0 %472 }
 0x119   : > { %v526_v51 = vsel %vm523_vm5, %v515_v22, %v525_v16  ;;  %816 = vmatpush1.bf16.msra.mxu0 %v4108_v38  ;;  %v471_v11 = vpop.permute.xlu1 %470  ;;  %v479_v53 = vrot.slane %v473_v41, 4 }
 0x11a   : > { %v3680_v13 = vcombine.low %v524_v50, %v526_v51  ;;  %v3681_v52 = vcombine.high %v524_v50, %v526_v51  ;;  %v478_v54 = vrot.slane %v471_v11, 4 }
 0x11c   : > { %v477_v44 = vpop.permute.xlu0 %476  ;;  %817 = vmatprep.subr.bf16.mxu0 %v3681_v52  ;;  %v482_v59 = vsel %vm407_vm7, %v478_v54, %v479_v53 }
 0x11d   : > { %v481_v55 = vrot.slane %v477_v44, 4  ;;  %818 = vmatpush1.bf16.msra.mxu0 %v3680_v13  ;;  %v475_v56 = vpop.permute.xlu1 %474  ;;  %v484_v2 = vsel %vm483_vm4, %v471_v11, %v482_v59  ;;  %v4054_v11 = vld [vmem:[%s4745_s2] ss:$8 sps:$4 sm:$0xff]  }
 0x11e   : > { %v480_v60 = vrot.slane %v475_v56, 4 }
 0x120   : > { %v485_v61 = vsel %vm407_vm7, %v480_v60, %v481_v55  ;;  %v398_v62 = vpop.permute.xlu0 %397 }
 0x121   : > { %v486_v3 = vsel %vm483_vm4, %v475_v56, %v485_v61  ;;  %v396_v5 = vpop.permute.xlu1 %395  ;;  %v404_v8 = vrot.slane %v398_v62, 4  ;;  %v347_v62 = vld [vmem:[%s4749_s6] sm:$0xff] }
 0x122   : > { %v3678_v6 = vcombine.low %v484_v2, %v486_v3  ;;  %v3679_v7 = vcombine.high %v484_v2, %v486_v3  ;;  %v403_v9 = vrot.slane %v396_v5, 4  ;;  %v859_v63 = vsel %vm438_vm12, %v347_v62, 0 }
 0x123   : > { %v4427_v0 = vand.u32 4294901760, %v859_v63 }
 0x124   : > { %819 = vmatprep.subr.bf16.mxu0 %v3679_v7  ;;  %v402_v18 = vpop.permute.xlu0 %401  ;;  %v408_v17 = vsel %vm407_vm7, %v403_v9, %v404_v8  ;;  %v348_v7 = vld [vmem:[%s4749_s6 + $0x8] sm:$0xff] }
 0x125   : > { %v406_v19 = vrot.slane %v402_v18, 4  ;;  %820 = vmatpush1.bf16.msra.mxu0 %v3678_v6  ;;  %v400_v21 = vpop.permute.xlu1 %399  ;;  %v410_v28 = vsel %vm409_vm11, %v396_v5, %v408_v17  ;;  %v4430_v2 = vsub.f32 %v859_v63, %v4427_v0  ;;  %v862_v8 = vsel %vm438_vm12, %v348_v7, 0 }
 0x126   : > { %v405_v23 = vrot.slane %v400_v21, 4  ;;  %821 = vmatprep.subr.bf16.mxu0 %v3677_v14  ;;  %v4444_v9 = vand.u32 4294901760, %v862_v8 }
 0x127   : > { %v4433_v3 = vand.u32 4294901760, %v4430_v2 }
 0x128   : > { %v411_v25 = vsel %vm407_vm7, %v405_v23, %v406_v19  ;;  %v661_v27 = vpop.permute.xlu0 %660  ;;  %v4447_v14 = vsub.f32 %v862_v8, %v4444_v9 }
 0x129   : > { %v412_v31 = vsel %vm409_vm11, %v400_v21, %v411_v25  ;;  %822 = vmatpush1.bf16.msra.mxu0 %v3676_v46  ;;  %v659_v33 = vpop.permute.xlu1 %658  ;;  %v667_v22 = vrot.slane %v661_v27, 4  ;;  %v934_v5 = vsub.f32 %v4430_v2, %v4433_v3 }
 0x12a   : > { %v3674_v34 = vcombine.low %v410_v28, %v412_v31  ;;  %v3675_v35 = vcombine.high %v410_v28, %v412_v31  ;;  %v666_v38 = vrot.slane %v659_v33, 4  ;;  %v4450_v18 = vand.u32 4294901760, %v4447_v14 }
 0x12b   : > { %v4437_v6 = vand.u32 4294901760, %v934_v5 }
 0x12c   : > { %v665_v39 = vpop.permute.xlu0 %664  ;;  %823 = vmatprep.subr.bf16.mxu0 %v3675_v35  ;;  %v670_v12 = vsel %vm407_vm7, %v666_v38, %v667_v22  ;;  %v944_v23 = vsub.f32 %v4447_v14, %v4450_v18 }
 0x12d   : > { %v669_v40 = vrot.slane %v665_v39, 4  ;;  %824 = vmatpush1.bf16.msra.mxu0 %v3674_v34  ;;  %v663_v24 = vpop.permute.xlu1 %662  ;;  %v671_v47 = vsel %vm383_vm10, %v659_v33, %v670_v12  ;;  %3837 = vmatprep.mubr.f32.mxu1 %v4437_v6 }
 0x12e   : > { %v668_v16 = vrot.slane %v663_v24, 4  ;;  %v4454_v28 = vand.u32 4294901760, %v944_v23 }
 0x130   : > { %v672_v41 = vsel %vm407_vm7, %v668_v16, %v669_v40 }
 0x131   : > { %v673_v49 = vsel %vm383_vm10, %v663_v24, %v672_v41 }
 0x132   : > { %v3690_v50 = vcombine.low %v671_v47, %v673_v49  ;;  %v3691_v51 = vcombine.high %v671_v47, %v673_v49 }
 0x134   : > { %839 = vmatprep.subr.bf16.mxu0 %v3691_v51 }
 0x135   : > { %840 = vmatpush2.bf16.msra.mxu0 %v3690_v50 }
 0x138   : > { %842 = vmatmul.mubr.bf16.vlgmr.msra.gmra.mxu0 %v4054_v11 }
 0x139   : > { %v699_v13 = vpop.permute.xlu0 %698 }
 0x13a   : > { %v704_v56 = vpop.permute.xlu1 %703 }
 0x1f8   : > { %v843_v52 = vpop.f32.mrf.mxu0 }
 0x1f9   : > { %v4411_v54 = vadd.f32 %v843_v52, %v699_v13 }
 0x1fa   : > { %v845_v53 = vpop.f32.mrf.mxu0 }
 0x1fb   : > { %v4413_v44 = vadd.f32 %v845_v53, %v699_v13 }
 0x1fc   : > { %v847_v55 = vpop.f32.mrf.mxu0 }
 0x1fd   : > { %v852_v57 = vadd.f32 %v4413_v44, %v4411_v54  ;;  %v4417_v59 = vadd.f32 %v847_v55, %v704_v56 }
 0x1fe   : > { %v849_v45 = vpop.f32.mrf.mxu0 }
 0x1ff   : > { %v4419_v60 = vadd.f32 %v849_v45, %v704_v56  ;;  %853 = vadd.xlane.f32.xlu0 %v852_v57 }
 0x201   : > { %v855_v61 = vadd.f32 %v4419_v60, %v4417_v59 }
 0x203   : > { %856 = vadd.xlane.f32.xlu1 %v855_v61 }
 0x288   : > { %v854_v19 = vpop.xlane.xlu0 %853 }
 0x289   : > { %v896_v21 = vand.u32 4294901760, %v854_v19 }
 0x28b   : > { %v988_v17 = vsub.f32 %v854_v19, %v896_v21 }
 0x28c   : > { %v857_v46 = vpop.xlane.xlu1 %856 }
 0x28d   : > { %v893_v25 = vand.u32 4294901760, %v857_v46  ;;  %v989_v31 = vand.u32 4294901760, %v988_v17 }
 0x28f   : > { %v981_v27 = vsub.f32 %v857_v46, %v893_v25  ;;  %3833 = vmatprep.subr.mxu1 %v893_v25  ;;  %v990_v35 = vsub.f32 %v988_v17, %v989_v31 }
 0x290   : > { %3834 = vmatpush3.msra.mxu1 %v893_v25 }
 0x291   : > { %3835 = vmatprep.subr.mxu1 %v896_v21  ;;  %v982_v33 = vand.u32 4294901760, %v981_v27  ;;  %v991_v38 = vand.u32 4294901760, %v990_v35 }
 0x292   : > { %3836 = vmatpush3.msra.mxu1 %v896_v21 }
 0x293   : > { %3838 = vmatmul.mubr.f32.vlgmr.msra.gmra.mxu1 %v4454_v28  ;;  %v983_v34 = vsub.f32 %v981_v27, %v982_v33 }
 0x294   : > { %3844 = vmatprep.mubr.f32.mxu1 %v4427_v0 }
 0x295   : > { %v984_v22 = vand.u32 4294901760, %v983_v34 }
 0x297   : > { %3840 = vmatprep.subr.mxu1 %v984_v22 }
 0x298   : > { %3841 = vmatpush3.msra.mxu1 %v984_v22 }
 0x299   : > { %3842 = vmatprep.subr.mxu1 %v991_v38 }
 0x29a   : > { %3843 = vmatpush3.msra.mxu1 %v991_v38 }
 0x29b   : > { %3845 = vmatmul.mubr.f32.vlgmr.msra.gmra.mxu1 %v4444_v9  ;;  %3847 = vmatprep.subr.mxu1 %v981_v27 }
 0x29c   : > { %3848 = vmatpush3.msra.mxu1 %v981_v27  ;;  %3851 = vmatprep.mubr.f32.mxu1 %v4430_v2 }
 0x29d   : > { %3849 = vmatprep.subr.mxu1 %v988_v17 }
 0x29e   : > { %3850 = vmatpush3.msra.mxu1 %v988_v17 }
 0x29f   : > { %3852 = vmatmul.mubr.f32.vlgmr.msra.gmra.mxu1 %v4447_v14  ;;  %3854 = vmatprep.subr.mxu1 %v893_v25 }
 0x2a0   : > { %3855 = vmatpush3.msra.mxu1 %v893_v25  ;;  %3858 = vmatprep.mubr.f32.mxu1 %v4433_v3 }
 0x2a1   : > { %3856 = vmatprep.subr.mxu1 %v896_v21 }
 0x2a2   : > { %3857 = vmatpush3.msra.mxu1 %v896_v21 }
 0x2a3   : > { %3859 = vmatmul.mubr.f32.vlgmr.msra.gmra.mxu1 %v4450_v18  ;;  %3861 = vmatprep.subr.mxu1 %v982_v33 }
 0x2a4   : > { %3862 = vmatpush3.msra.mxu1 %v982_v33  ;;  %3865 = vmatprep.mubr.f32.mxu1 %v4427_v0 }
 0x2a5   : > { %3863 = vmatprep.subr.mxu1 %v989_v31 }
 0x2a6   : > { %3864 = vmatpush3.msra.mxu1 %v989_v31 }
 0x2a7   : > { %3866 = vmatmul.mubr.f32.vlgmr.msra.gmra.mxu1 %v4444_v9  ;;  %3868 = vmatprep.subr.mxu1 %v893_v25 }
 0x2a8   : > { %3869 = vmatpush3.msra.mxu1 %v893_v25  ;;  %3872 = vmatprep.mubr.f32.mxu1 %v4427_v0 }
 0x2a9   : > { %3870 = vmatprep.subr.mxu1 %v896_v21 }
 0x2aa   : > { %3871 = vmatpush3.msra.mxu1 %v896_v21 }
 0x2ab   : > { %3873 = vmatmul.mubr.f32.vlgmr.msra.gmra.mxu1 %v4444_v9 }
 0x2ac   : > { %3879 = vmatprep.mubr.f32.mxu1 %v4437_v6 }
 0x353   : > { %v3839_v39 = vpop.f32.mrf.mxu1 }
 0x355   : > { %v937_v40 = vpop.f32.mrf.mxu1 }
 0x35b   : > { %v3846_v24 = vpop.f32.mrf.mxu1 }
 0x35c   : > { %v1035_v49 = vadd.f32 %v3846_v24, %v3839_v39 }
 0x35d   : > { %v1028_v12 = vpop.f32.mrf.mxu1 }
 0x35e   : > { %v1029_v51 = vadd.f32 %v1028_v12, %v937_v40 }
 0x35f   : > { %v3853_v16 = vpop.f32.mrf.mxu1 }
 0x360   : > { %v1118_v11 = vadd.f32 %v3853_v16, %v1035_v49 }
 0x361   : > { %v1110_v41 = vpop.f32.mrf.mxu1 }
 0x362   : > { %v1111_v52 = vadd.f32 %v1110_v41, %v1029_v51  ;;  %v4129_v41 = vmov 1  }
 0x363   : > { %v3860_v47 = vpop.f32.mrf.mxu1 }
 0x364   : > { %v1201_v53 = vadd.f32 %v3860_v47, %v1118_v11 }
 0x365   : > { %v1192_v50 = vpop.f32.mrf.mxu1 }
 0x366   : > { %v1193_v56 = vadd.f32 %v1192_v50, %v1111_v52 }
 0x367   : > { %v3867_v13 = vpop.f32.mrf.mxu1 }
 0x368   : > { %v1284_v57 = vadd.f32 %v3867_v13, %v1201_v53 }
 0x369   : > { %v1277_v55 = vpop.f32.mrf.mxu1 }
 0x36a   : > { %v1278_v61 = vadd.f32 %v1277_v55, %v1193_v56 }
 0x36b   : > { %v3874_v45 = vpop.f32.mrf.mxu1 }
 0x36c   : > { %v1363_v62 = vadd.f32 %v3874_v45, %v1284_v57 }
 0x36d   : > { %v1356_v63 = vpop.f32.mrf.mxu1 }
 0x36e   : > { %v1357_v5 = vadd.f32 %v1356_v63, %v1278_v61  ;;  %1373 = vperm.xlu1 %4030, %v1363_v62  }
 0x370   : > { %1368 = vperm.xlu0 %4031, %v1357_v5  }
 0x372   : > { %4032 = vset.pattern.permute.xlu1 %v4129_v41 }
 0x3e9   : > { %v1374_v7 = vpop.permute.xlu1 %1373 }
 0x3ea   : > { %v4469_v8 = vsub.f32 %v4417_v59, %v1374_v7  ;;  %v4472_v19 = vsub.f32 %v4419_v60, %v1374_v7 }
 0x3eb   : > { %v1369_v21 = vpop.permute.xlu0 %1368 }
 0x3ec   : > { %v4475_v17 = vsub.f32 %v4411_v54, %v1369_v21  ;;  %v4478_v23 = vsub.f32 %v4413_v44, %v1369_v21  ;;  %v1382_v46 = vmul.f32 %v4469_v8, %v4469_v8  ;;  %v1383_v25 = vmul.f32 %v4472_v19, %v4472_v19 }
 0x3ee   : > { %v1387_v27 = vadd.f32 %v1383_v25, %v1382_v46  ;;  %v1380_v59 = vmul.f32 %v4475_v17, %v4475_v17  ;;  %v1381_v60 = vmul.f32 %v4478_v23, %v4478_v23 }
 0x3f0   : > { %1388 = vadd.xlane.f32.xlu1 %v1387_v27  ;;  %v1384_v31 = vadd.f32 %v1381_v60, %v1380_v59 }
 0x3f2   : > { %1385 = vadd.xlane.f32.xlu0 %v1384_v31 }
 0x401   : > { %1909 = vperm.xlu1 %4032, %v4353_v15  }
 0x405   : > { %1913 = vperm.xlu1 %4032, %v4358_v43  }
 0x409   : > { %4034 = vset.pattern.permute.xlu1 %v4119_v1 }
 0x479   : > { %v1389_v54 = vpop.xlane.xlu1 %1388 }
 0x47a   : > { %v1419_v33 = vand.u32 4294901760, %v1389_v54 }
 0x47b   : > { %v1386_v44 = vpop.xlane.xlu0 %1385 }
 0x47c   : > { %v1507_v34 = vsub.f32 %v1389_v54, %v1419_v33  ;;  %v1422_v35 = vand.u32 4294901760, %v1386_v44  ;;  %3875 = vmatprep.subr.mxu1 %v1419_v33 }
 0x47d   : > { %3876 = vmatpush3.msra.mxu1 %v1419_v33 }
 0x47e   : > { %v1514_v22 = vsub.f32 %v1386_v44, %v1422_v35  ;;  %3877 = vmatprep.subr.mxu1 %v1422_v35  ;;  %v1508_v38 = vand.u32 4294901760, %v1507_v34  ;;  %v4130_v44 = vmov 2  }
 0x47f   : > { %3878 = vmatpush3.msra.mxu1 %v1422_v35 }
 0x480   : > { %3880 = vmatmul.mubr.f32.vlgmr.msra.gmra.mxu1 %v4454_v28  ;;  %v1509_v39 = vsub.f32 %v1507_v34, %v1508_v38  ;;  %v1515_v40 = vand.u32 4294901760, %v1514_v22 }
 0x481   : > { %3886 = vmatprep.mubr.f32.mxu1 %v4427_v0 }
 0x482   : > { %v1510_v24 = vand.u32 4294901760, %v1509_v39  ;;  %v1516_v12 = vsub.f32 %v1514_v22, %v1515_v40  ;;  %v2155_v39 = vld [vmem:[#allocation2 + $0x1c] sm:$0xf] }
 0x484   : > { %3882 = vmatprep.subr.mxu1 %v1510_v24  ;;  %v1517_v16 = vand.u32 4294901760, %v1516_v12 }
 0x485   : > { %3883 = vmatpush3.msra.mxu1 %v1510_v24  ;;  %v2121_v24 = vld [vmem:[#allocation2 + $0xc] sm:$0xf] }
 0x486   : > { %3884 = vmatprep.subr.mxu1 %v1517_v16  ;;  %v2125_v12 = vmul.bf16 %v2121_v24, %v4252_v36 }
 0x487   : > { %3885 = vmatpush3.msra.mxu1 %v1517_v16  ;;  %v2123_v16 = vld [vmem:[#allocation2 + $0x1c] sm:$0xf] }
 0x488   : > { %3887 = vmatmul.mubr.f32.vlgmr.msra.gmra.mxu1 %v4444_v9  ;;  %3889 = vmatprep.subr.mxu1 %v1507_v34  ;;  %v2127_v41 = vmul.bf16 %v2123_v16, %v4252_v36 }
 0x489   : > { %3890 = vmatpush3.msra.mxu1 %v1507_v34  ;;  %3893 = vmatprep.mubr.f32.mxu1 %v4430_v2  ;;  %v1933_v34 = vld [vmem:[%s293_s19 + $0x8] sm:$0xff] }
 0x48a   : > { %3891 = vmatprep.subr.mxu1 %v1514_v22 }
 0x48b   : > { %3892 = vmatpush3.msra.mxu1 %v1514_v22  ;;  %v2153_v22 = vld [vmem:[#allocation2 + $0xc] sm:$0xf] }
 0x48c   : > { %3894 = vmatmul.mubr.f32.vlgmr.msra.gmra.mxu1 %v4447_v14  ;;  %3896 = vmatprep.subr.mxu1 %v1419_v33 }
 0x48d   : > { %3897 = vmatpush3.msra.mxu1 %v1419_v33  ;;  %3900 = vmatprep.mubr.f32.mxu1 %v4433_v3 }
 0x48e   : > { %3898 = vmatprep.subr.mxu1 %v1422_v35 }
 0x48f   : > { %3899 = vmatpush3.msra.mxu1 %v1422_v35 }
 0x490   : > { %3901 = vmatmul.mubr.f32.vlgmr.msra.gmra.mxu1 %v4450_v18  ;;  %3903 = vmatprep.subr.mxu1 %v1508_v38 }
 0x491   : > { %3904 = vmatpush3.msra.mxu1 %v1508_v38  ;;  %3907 = vmatprep.mubr.f32.mxu1 %v4427_v0  ;;  %v2157_v38 = vmul.bf16 %v2153_v22, %v4242_v29 }
 0x492   : > { %3905 = vmatprep.subr.mxu1 %v1515_v40 }
 0x493   : > { %3906 = vmatpush3.msra.mxu1 %v1515_v40  ;;  %v2159_v40 = vmul.bf16 %v2155_v39, %v4242_v29 }
 0x494   : > { %3908 = vmatmul.mubr.f32.vlgmr.msra.gmra.mxu1 %v4444_v9  ;;  %3910 = vmatprep.subr.mxu1 %v1419_v33 }
 0x495   : > { %3911 = vmatpush3.msra.mxu1 %v1419_v33  ;;  %3914 = vmatprep.mubr.f32.mxu1 %v4427_v0 }
 0x496   : > { %3912 = vmatprep.subr.mxu1 %v1422_v35 }
 0x497   : > { %3913 = vmatpush3.msra.mxu1 %v1422_v35  ;;  %v1932_v35 = vld [vmem:[%s293_s19] sm:$0xff] }
 0x498   : > { %3915 = vmatmul.mubr.f32.vlgmr.msra.gmra.mxu1 %v4444_v9 }
 0x499   : > { %3921 = vmatprep.mubr.f32.mxu1 %v4437_v6 }
 0x540   : > { %v3881_v47 = vpop.f32.mrf.mxu1 }
 0x541   : > { %v1474_v52 = vadd.f32 1e-05, %v3881_v47  ;;  %v2185_v47 = vld [vmem:[#allocation2 + $0xc] sm:$0xf] }
 0x542   : > { %v1463_v49 = vpop.f32.mrf.mxu1 }
 0x543   : > { %v1464_v55 = vadd.f32 1e-05, %v1463_v49  ;;  %v2187_v49 = vld [vmem:[#allocation2 + $0x1c] sm:$0xf] }
 0x548   : > { %v3888_v50 = vpop.f32.mrf.mxu1 }
 0x549   : > { %v1561_v56 = vadd.f32 %v3888_v50, %v1474_v52  ;;  %v4038_v50 = vpack.i.bf16 %v2187_v49, %v2185_v47 }
 0x54a   : > { %v1554_v51 = vpop.f32.mrf.mxu1 }
 0x54b   : > { %v1555_v45 = vadd.f32 %v1554_v51, %v1464_v55  ;;  %v1910_v51 = vpop.permute.xlu1 %1909 }
 0x54c   : > { %v3895_v11 = vpop.f32.mrf.mxu1 }
 0x54d   : > { %v1644_v61 = vadd.f32 %v3895_v11, %v1561_v56 }
 0x54e   : > { %v1636_v13 = vpop.f32.mrf.mxu1 }
 0x54f   : > { %v1637_v63 = vadd.f32 %v1636_v13, %v1555_v45  ;;  %v1914_v11 = vpop.permute.xlu1 %1913 }
 0x550   : > { %v3902_v53 = vpop.f32.mrf.mxu1 }
 0x551   : > { %v1727_v5 = vadd.f32 %v3902_v53, %v1644_v61 }
 0x552   : > { %v1718_v57 = vpop.f32.mrf.mxu1 }
 0x553   : > { %v1719_v21 = vadd.f32 %v1718_v57, %v1637_v63 }
 0x554   : > { %v3909_v62 = vpop.f32.mrf.mxu1 }
 0x555   : > { %v1810_v46 = vadd.f32 %v3909_v62, %v1727_v5 }
 0x556   : > { %v1803_v7 = vpop.f32.mrf.mxu1 }
 0x557   : > { %v1804_v27 = vadd.f32 %v1803_v7, %v1719_v21 }
 0x558   : > { %v3916_v25 = vpop.f32.mrf.mxu1 }
 0x559   : > { %v1889_v59 = vadd.f32 %v3916_v25, %v1810_v46 }
 0x55a   : > { %v1882_v60 = vpop.f32.mrf.mxu1 }
 0x55b   : > { %4061 = vrsqrt.f32 %v1889_v59  ;;  %v1883_v31 = vadd.f32 %v1882_v60, %v1804_v27 }
 0x55d   : > { %4063 = vrsqrt.f32 %v1883_v31 }
 0x568   : > { %v4062_v54 = vpop.eup %4061 }
 0x569   : > { %1901 = vperm.xlu0 %4031, %v4062_v54  }
 0x56a   : > { %v4064_v33 = vpop.eup %4063 }
 0x56b   : > { %1896 = vperm.xlu1 %4034, %v4064_v33  }
 0x56d   : > { %4033 = vset.pattern.permute.xlu0 %v4130_v44 }
 0x56e   : > { %1921 = vperm.xlu0 %4033, %v4353_v15  }
 0x56f   : > { %4035 = vset.pattern.permute.xlu1 %v4130_v44 }
 0x570   : > { %1925 = vperm.xlu1 %4035, %v4358_v43  }
 0x572   : > { %4037 = vset.pattern.permute.xlu0 %v4119_v1 }
 0x573   : > { %1941 = vperm.xlu0 %4037, %v1933_v34  }
 0x574   : > { %4036 = vset.pattern.permute.xlu1 %v4119_v1 }
 0x575   : > { %1936 = vperm.xlu1 %4036, %v1932_v35  }
 0x577   : > { %2166 = vrot.lane.b32.xlu0 %v2157_v38, %s4124_s10 }
 0x579   : > { %4039 = vrot.lane.b32.xlu1 %v4038_v50, %s4127_s13 }
 0x57b   : > { %2170 = vrot.lane.b32.xlu0 %v2159_v40, %s4124_s10 }
 0x57f   : > { %2134 = vrot.lane.b32.xlu0 %v2125_v12, %s4122_s8 }
 0x583   : > { %2138 = vrot.lane.b32.xlu0 %v2127_v41, %s4122_s8 }
 0x5e4   : > { %v1902_v29 = vpop.permute.xlu0 %1901 }
 0x5e5   : > { %v1906_v13 = vmul.f32 %v1902_v29, %v4469_v8  ;;  %v1907_v52 = vmul.f32 %v1902_v29, %v4472_v19 }
 0x5e6   : > { %v1897_v53 = vpop.permute.xlu1 %1896 }
 0x5e7   : > { %v1904_v55 = vmul.f32 %v1897_v53, %v4475_v17  ;;  %v1905_v56 = vmul.f32 %v1897_v53, %v4478_v23  ;;  %v1918_v57 = vmul.f32 %v1914_v11, %v1906_v13  ;;  %v1919_v45 = vmul.f32 %v1914_v11, %v1907_v52 }
 0x5e9   : > { %v1922_v36 = vpop.permute.xlu0 %1921  ;;  %v1916_v61 = vmul.f32 %v1910_v51, %v1904_v55  ;;  %v1917_v62 = vmul.f32 %v1910_v51, %v1905_v56 }
 0x5eb   : > { %v1926_v63 = vpop.permute.xlu1 %1925  ;;  %v1928_v46 = vadd.f32 %v1922_v36, %v1916_v61  ;;  %v1929_v25 = vadd.f32 %v1922_v36, %v1917_v62 }
 0x5ec   : > { %v1930_v5 = vadd.f32 %v1926_v63, %v1918_v57  ;;  %v1931_v7 = vadd.f32 %v1926_v63, %v1919_v45 }
 0x5ee   : > { %v1942_v21 = vpop.permute.xlu0 %1941 }
 0x5ef   : > { %v1946_v27 = vadd.f32 %v1942_v21, %v1930_v5  ;;  %v1947_v8 = vadd.f32 %v1942_v21, %v1931_v7 }
 0x5f0   : > { %v1937_v59 = vpop.permute.xlu1 %1936 }
 0x5f1   : > { %v3695_v19 = vmul.f32 -1.442695, %v1946_v27  ;;  %v3696_v60 = vmul.f32 -1.442695, %v1947_v8  ;;  %v1944_v31 = vadd.f32 %v1937_v59, %v1928_v46  ;;  %v1945_v17 = vadd.f32 %v1937_v59, %v1929_v25 }
 0x5f3   : > { %4065 = vpow2.f32 %v3695_v19  ;;  %v3693_v23 = vmul.f32 -1.442695, %v1944_v31  ;;  %v3694_v54 = vmul.f32 -1.442695, %v1945_v17 }
 0x5f4   : > { %4067 = vpow2.f32 %v3696_v60  ;;  %v2213_v60 = vld [vmem:[#allocation2 + $0xc] sm:$0xf] }
 0x5f5   : > { %4069 = vpow2.f32 %v3693_v23 }
 0x5f6   : > { %4071 = vpow2.f32 %v3694_v54 }
 0x600   : > { %v4066_v33 = vpop.eup %4065 }
 0x601   : > { %v4068_v44 = vpop.eup %4067  ;;  %v1962_v34 = vadd.f32 1.0, %v4066_v33 }
 0x602   : > { %v4070_v35 = vpop.eup %4069  ;;  %v1963_v22 = vadd.f32 1.0, %v4068_v44 }
 0x603   : > { %v4072_v38 = vpop.eup %4071  ;;  %4073 = vrcp.f32 %v1962_v34  ;;  %v1960_v39 = vadd.f32 1.0, %v4070_v35 }
 0x604   : > { %4075 = vrcp.f32 %v1963_v22  ;;  %v1961_v40 = vadd.f32 1.0, %v4072_v38 }
 0x605   : > { %4077 = vrcp.f32 %v1960_v39  ;;  %v4040_v39 = vpop.permute.xlu1 %4039 }
 0x606   : > { %4079 = vrcp.f32 %v1961_v40 }
 0x610   : > { %v4074_v24 = vpop.eup %4073 }
 0x611   : > { %v4076_v12 = vpop.eup %4075  ;;  %v4524_v16 = vmul.f32 %v4074_v24, %v1946_v27 }
 0x612   : > { %v4078_v41 = vpop.eup %4077  ;;  %v4526_v47 = vmul.f32 %v4076_v12, %v1947_v8 }
 0x613   : > { %v4080_v49 = vpop.eup %4079  ;;  %v4528_v50 = vmul.f32 %v4078_v41, %v1944_v31  ;;  %v4041_v41 = vunpack.i.l.bf16 %v4040_v39 }
 0x614   : > { %v4532_v51 = vpack.c.bf16 %v4526_v47, %v4524_v16  ;;  %v4534_v11 = vmul.f32 %v4080_v49, %v1945_v17  ;;  %v2217_v17 = vmul.bf16 %v2213_v60, %v4323_v32 }
 0x615   : > { %v4109_v13 = vpack.c.bf16 %v4524_v16, %v4528_v50 }
 0x616   : > { %1991 = vst [vmem:[#allocation2 + $0x14] sm:$0xff] %v4532_v51  ;;  %v3735_v29 = vpack.c.bf16 %v4534_v11, %v4528_v50  ;;  %2196 = vrot.lane.b32.xlu0 %v4532_v51, %s4127_s13  ;;  %v4110_v52 = vpack.c.bf16 %v4526_v47, %v4534_v11  ;;  %v2158_v45 = vmul.bf16 %v4532_v51, %v4246_v30 }
 0x617   : > { %v2126_v62 = vmul.bf16 %v4532_v51, %v4262_v42 }
 0x618   : > { %1990 = vst [vmem:[#allocation2 + $0x4] sm:$0xff] %v3735_v29  ;;  %v2156_v31 = vmul.bf16 %v3735_v29, %v4246_v30  ;;  %v2216_v34 = vmul.bf16 %v3735_v29, %v4332_v37 }
 0x61d   : > { %v2026_v53 = vld [vmem:[#allocation2 + $0x10] sm:$0xff]  ;;  %v2027_v55 = vld [vmem:[#allocation2 + $0x18] sm:$0xf] }
 0x61e   : > { %v2087_v56 = vld [vmem:[#allocation2 + $0x18] sm:$0xf]  ;;  %2036 = vrot.lane.b32.xlu1 %v2026_v53, %s4128_s14  ;;  %2038 = vrot.lane.b32.xlu0 %v2027_v55, %s4128_s14  ;;  %v2090_v7 = vmul.bf16 %v2026_v53, %v4278_v58  ;;  %v2058_v25 = vmul.bf16 %v2026_v53, %v4298_v10  ;;  %v1998_v33 = vmul.bf16 %v2026_v53, %v4314_v26  ;;  %v2201_v53 = vrot.slane %v4041_v41, 4 }
 0x61f   : > { %v2091_v36 = vmul.bf16 %v2087_v56, %v4270_v48  ;;  %v2055_v57 = vld [vmem:[#allocation2 + $0x18] sm:$0xf]  ;;  %v2025_v63 = vld [vmem:[#allocation2 + $0x8] sm:$0xf]  ;;  %v2024_v19 = vld [vmem:[#allocation2] sm:$0xff] }
 0x620   : > { %v2059_v61 = vmul.bf16 %v2055_v57, %v4290_v4  ;;  %v1995_v5 = vld [vmem:[#allocation2 + $0x18] sm:$0xf]  ;;  %v2085_v46 = vld [vmem:[#allocation2 + $0x8] sm:$0xf]  ;;  %v2088_v44 = vmul.bf16 %v2024_v19, %v4278_v58  ;;  %v2218_v58 = vmul.bf16 %v4532_v51, %v4332_v37  ;;  %v4042_v37 = vunpack.i.h.bf16 %v4040_v39 }
 0x621   : > { %v1999_v21 = vmul.bf16 %v1995_v5, %v4306_v20  ;;  %v2089_v27 = vmul.bf16 %v2085_v46, %v4270_v48  ;;  %v2053_v8 = vld [vmem:[#allocation2 + $0x8] sm:$0xf]  ;;  %v2124_v48 = vmul.bf16 %v3735_v29, %v4262_v42  ;;  %v2056_v42 = vmul.bf16 %v2024_v19, %v4298_v10 }
 0x622   : > { %2192 = vrot.lane.b32.xlu1 %v3735_v29, %s4127_s13  ;;  %2102 = vrot.lane.b32.xlu0 %v2091_v36, %s4123_s9  ;;  %v2057_v59 = vmul.bf16 %v2053_v8, %v4290_v4  ;;  %v1993_v23 = vld [vmem:[#allocation2 + $0x8] sm:$0xf]  ;;  %v2215_v4 = vld [vmem:[#allocation2 + $0x1c] sm:$0xf]  ;;  %v4131_v10 = vmov 3  }
 0x623   : > { %v1997_v54 = vmul.bf16 %v1993_v23, %v4306_v20  ;;  %v2219_v30 = vmul.bf16 %v2215_v4, %v4323_v32  ;;  %v1996_v20 = vmul.bf16 %v2024_v19, %v4314_v26  ;;  %v4057_v32 = vld [vmem:[%s4746_s3 + $0x4] ss:$8 sps:$4 sm:$0xff]   ;;  %4044 = vset.pattern.permute.xlu0 %v4131_v10  ;;  %4043 = vset.pattern.permute.xlu1 %v4131_v10  ;;  %v2167_v26 = vpop.permute.xlu0 %2166 }
 0x624   : > { %3719 = vmatprep.mubr.msk.bf16.mxu0 %vm438_vm12, %v4057_v32 }
 0x626   : > { %2168 = vrot.lane.b32.xlu1 %v2158_v45, %s4124_s10  ;;  %2070 = vrot.lane.b32.xlu0 %v2059_v61, %s4121_s30 }
 0x627   : > { %v2171_v35 = vpop.permute.xlu0 %2170 }
 0x62a   : > { %2136 = vrot.lane.b32.xlu1 %v2126_v62, %s4122_s8  ;;  %2034 = vrot.lane.b32.xlu0 %v2025_v63, %s4128_s14 }
 0x62b   : > { %v2135_v22 = vpop.permute.xlu0 %2134 }
 0x62e   : > { %2100 = vrot.lane.b32.xlu1 %v2090_v7, %s4123_s9  ;;  %2010 = vrot.lane.b32.xlu0 %v1999_v21, %s4126_s12 }
 0x62f   : > { %v2139_v38 = vpop.permute.xlu0 %2138 }
 0x632   : > { %2068 = vrot.lane.b32.xlu1 %v2058_v25, %s4121_s30  ;;  %2098 = vrot.lane.b32.xlu0 %v2089_v27, %s4123_s9 }
 0x636   : > { %2032 = vrot.lane.b32.xlu1 %v2024_v19, %s4128_s14  ;;  %2066 = vrot.lane.b32.xlu0 %v2057_v59, %s4121_s30  ;;  %v2175_v59 = vrot.slane %v2171_v35, 4 }
 0x63a   : > { %2164 = vrot.lane.b32.xlu1 %v2156_v31, %s4124_s10  ;;  %2226 = vrot.lane.b32.xlu0 %v2217_v17, %s4125_s11  ;;  %v2173_v31 = vrot.slane %v2167_v26, 4 }
 0x63e   : > { %2132 = vrot.lane.b32.xlu1 %v2124_v48, %s4122_s8  ;;  %2006 = vrot.lane.b32.xlu0 %v1997_v54, %s4126_s12  ;;  %v2143_v54 = vrot.slane %v2139_v38, 4 }
 0x642   : > { %2008 = vrot.lane.b32.xlu1 %v1998_v33, %s4126_s12  ;;  %2230 = vrot.lane.b32.xlu0 %v2219_v30, %s4125_s11  ;;  %v2141_v33 = vrot.slane %v2135_v22, 4 }
 0x646   : > { %2096 = vrot.lane.b32.xlu1 %v2088_v44, %s4123_s9  ;;  %2263 = vperm.xlu0 %4044, %v4353_v15   ;;  %v2203_v15 = vrot.slane %v4042_v37, 4 }
 0x64a   : > { %2064 = vrot.lane.b32.xlu1 %v2056_v42, %s4121_s30  ;;  %4046 = vset.pattern.permute.xlu0 %v4119_v1 }
 0x64e   : > { %2004 = vrot.lane.b32.xlu1 %v1996_v20, %s4126_s12 }
 0x652   : > { %2224 = vrot.lane.b32.xlu1 %v2216_v34, %s4125_s11 }
 0x656   : > { %2228 = vrot.lane.b32.xlu1 %v2218_v58, %s4125_s11 }
 0x65a   : > { %2267 = vperm.xlu1 %4043, %v4358_v43  }
 0x65e   : > { %4045 = vset.pattern.permute.xlu1 %v4119_v1 }
 0x688   : > { %v2197_v40 = vpop.permute.xlu0 %2196 }
 0x689   : > { %v2202_v49 = vrot.slane %v2197_v40, 4 }
 0x68b   : > { %v2206_v43 = vsel %vm407_vm7, %v2202_v49, %v2203_v15 }
 0x68c   : > { %v2207_v36 = vsel %vm632_vm8, %v2197_v40, %v2206_v43 }
 0x690   : > { %v4601_v24 = vpop.permute.xlu1 %2036  ;;  %v4603_v12 = vpop.permute.xlu0 %2038 }
 0x694   : > { %v2193_v51 = vpop.permute.xlu1 %2192  ;;  %v2103_v29 = vpop.permute.xlu0 %2102 }
 0x695   : > { %v2200_v55 = vrot.slane %v2193_v51, 4  ;;  %v2107_v15 = vrot.slane %v2103_v29, 4  ;;  %v2043_v29 = vrot.slane %v4603_v12, 4 }
 0x697   : > { %v2204_v56 = vsel %vm407_vm7, %v2200_v55, %v2201_v53 }
 0x698   : > { %v2205_v57 = vsel %vm632_vm8, %v2193_v51, %v2204_v56  ;;  %v2169_v45 = vpop.permute.xlu1 %2168  ;;  %v2071_v63 = vpop.permute.xlu0 %2070 }
 0x699   : > { %v3715_v61 = vcombine.low %v2205_v57, %v2207_v36  ;;  %v3716_v62 = vcombine.high %v2205_v57, %v2207_v36  ;;  %v2174_v8 = vrot.slane %v2169_v45, 4  ;;  %v2075_v36 = vrot.slane %v2071_v63, 4 }
 0x69a   : > { %v2042_v57 = vrot.slane %v4601_v24, 4 }
 0x69b   : > { %2372 = vmatprep.subr.bf16.mxu0 %v3716_v62  ;;  %v2178_v17 = vsel %vm407_vm7, %v2174_v8, %v2175_v59 }
 0x69c   : > { %v2137_v5 = vpop.permute.xlu1 %2136  ;;  %2373 = vmatpush1.bf16.msra.mxu0 %v3715_v61  ;;  %v2035_v7 = vpop.permute.xlu0 %2034  ;;  %v2179_v30 = vsel %vm458_vm9, %v2169_v45, %v2178_v17 }
 0x69d   : > { %v2142_v23 = vrot.slane %v2137_v5, 4  ;;  %v2041_v45 = vrot.slane %v2035_v7, 4  ;;  %v2046_v7 = vsel %vm407_vm7, %v2042_v57, %v2043_v29 }
 0x69f   : > { %v2146_v20 = vsel %vm407_vm7, %v2142_v23, %v2143_v54 }
 0x6a0   : > { %v2101_v21 = vpop.permute.xlu1 %2100  ;;  %v4611_v25 = vpop.permute.xlu0 %2010  ;;  %v2147_v35 = vsel %vm498_vm6, %v2137_v5, %v2146_v20 }
 0x6a1   : > { %v2106_v22 = vrot.slane %v2101_v21, 4 }
 0x6a3   : > { %v2110_v53 = vsel %vm407_vm7, %v2106_v22, %v2107_v15 }
 0x6a4   : > { %v4609_v46 = vpop.permute.xlu1 %2068  ;;  %v2099_v19 = vpop.permute.xlu0 %2098  ;;  %v2111_v62 = vsel %vm523_vm5, %v2101_v21, %v2110_v53 }
 0x6a5   : > { %v2074_v41 = vrot.slane %v4609_v46, 4  ;;  %v2105_v43 = vrot.slane %v2099_v19, 4 }
 0x6a7   : > { %v2078_v5 = vsel %vm407_vm7, %v2074_v41, %v2075_v36 }
 0x6a8   : > { %v4613_v27 = vpop.permute.xlu1 %2032  ;;  %v2067_v10 = vpop.permute.xlu0 %2066  ;;  %v2079_v17 = vsel %vm483_vm4, %v4609_v46, %v2078_v5 }
 0x6a9   : > { %v2040_v55 = vrot.slane %v4613_v27, 4  ;;  %v2073_v8 = vrot.slane %v2067_v10, 4 }
 0x6ab   : > { %v2044_v47 = vsel %vm407_vm7, %v2040_v55, %v2041_v45 }
 0x6ac   : > { %v2165_v60 = vpop.permute.xlu1 %2164  ;;  %v2227_v49 = vpop.permute.xlu0 %2226  ;;  %v2045_v16 = vsel %vm438_vm12, %v4613_v27, %v2044_v47 }
 0x6ad   : > { %v2172_v48 = vrot.slane %v2165_v60, 4 }
 0x6af   : > { %v2176_v4 = vsel %vm407_vm7, %v2172_v48, %v2173_v31  ;;  %v2015_v31 = vrot.slane %v4611_v25, 4 }
 0x6b0   : > { %v2177_v44 = vsel %vm458_vm9, %v2165_v60, %v2176_v4  ;;  %v2133_v42 = vpop.permute.xlu1 %2132  ;;  %v2007_v63 = vpop.permute.xlu0 %2006 }
 0x6b1   : > { %v3713_v34 = vcombine.low %v2177_v44, %v2179_v30  ;;  %v3714_v32 = vcombine.high %v2177_v44, %v2179_v30  ;;  %v2140_v58 = vrot.slane %v2133_v42, 4  ;;  %v2013_v23 = vrot.slane %v2007_v63, 4 }
 0x6b3   : > { %v2144_v26 = vsel %vm407_vm7, %v2140_v58, %v2141_v33  ;;  %2374 = vmatprep.subr.bf16.mxu0 %v3714_v32  ;;  %v2047_v33 = vsel %vm438_vm12, %v4601_v24, %v2046_v7  ;;  %v2233_v58 = vrot.slane %v2227_v49, 4  ;;  %v4059_v49 = vld [vmem:[%s4746_s3] ss:$8 sps:$4 sm:$0xff]  }
 0x6b4   : > { %v2145_v38 = vsel %vm498_vm6, %v2133_v42, %v2144_v26  ;;  %v2009_v39 = vpop.permute.xlu1 %2008  ;;  %2375 = vmatpush1.bf16.msra.mxu0 %v3713_v34  ;;  %v3704_v30 = vcombine.high %v2045_v16, %v2047_v33  ;;  %v3703_v20 = vcombine.low %v2045_v16, %v2047_v33  ;;  %v2231_v32 = vpop.permute.xlu0 %2230 }
 0x6b5   : > { %v3711_v40 = vcombine.low %v2145_v38, %v2147_v35  ;;  %v3712_v37 = vcombine.high %v2145_v38, %v2147_v35  ;;  %v2014_v60 = vrot.slane %v2009_v39, 4  ;;  %v2235_v24 = vrot.slane %v2231_v32, 4 }
 0x6b7   : > { %2376 = vmatprep.subr.bf16.mxu0 %v3712_v37  ;;  %v2018_v25 = vsel %vm407_vm7, %v2014_v60, %v2015_v31 }
 0x6b8   : > { %v2097_v51 = vpop.permute.xlu1 %2096  ;;  %2377 = vmatpush1.bf16.msra.mxu0 %v3711_v40  ;;  %v2019_v34 = vsel %vm409_vm11, %v2009_v39, %v2018_v25 }
 0x6b9   : > { %v2104_v56 = vrot.slane %v2097_v51, 4  ;;  %2378 = vmatprep.subr.bf16.mxu0 %v4110_v52 }
 0x6bb   : > { %v2108_v61 = vsel %vm407_vm7, %v2104_v56, %v2105_v43 }
 0x6bc   : > { %v2109_v59 = vsel %vm523_vm5, %v2097_v51, %v2108_v61  ;;  %v2065_v19 = vpop.permute.xlu1 %2064  ;;  %2379 = vmatpush1.bf16.msra.mxu0 %v4109_v13 }
 0x6bd   : > { %v3707_v11 = vcombine.low %v2109_v59, %v2111_v62  ;;  %v3708_v52 = vcombine.high %v2109_v59, %v2111_v62  ;;  %v2072_v12 = vrot.slane %v2065_v19, 4 }
 0x6bf   : > { %v2076_v21 = vsel %vm407_vm7, %v2072_v12, %v2073_v8  ;;  %2380 = vmatprep.subr.bf16.mxu0 %v3708_v52 }
 0x6c0   : > { %v2077_v50 = vsel %vm483_vm4, %v2065_v19, %v2076_v21  ;;  %v2005_v13 = vpop.permute.xlu1 %2004  ;;  %2381 = vmatpush1.bf16.msra.mxu0 %v3707_v11 }
 0x6c1   : > { %v3705_v48 = vcombine.low %v2077_v50, %v2079_v17  ;;  %v3706_v54 = vcombine.high %v2077_v50, %v2079_v17  ;;  %v2012_v4 = vrot.slane %v2005_v13, 4  ;;  %v2264_v51 = vpop.permute.xlu0 %2263 }
 0x6c3   : > { %v2016_v44 = vsel %vm407_vm7, %v2012_v4, %v2013_v23  ;;  %2382 = vmatprep.subr.bf16.mxu0 %v3706_v54 }
 0x6c4   : > { %v2017_v46 = vsel %vm409_vm11, %v2005_v13, %v2016_v44  ;;  %v2225_v27 = vpop.permute.xlu1 %2224  ;;  %2383 = vmatpush1.bf16.msra.mxu0 %v3705_v48 }
 0x6c5   : > { %v2232_v42 = vrot.slane %v2225_v27, 4  ;;  %2384 = vmatprep.subr.bf16.mxu0 %v3704_v30  ;;  %v3702_v10 = vcombine.high %v2017_v46, %v2019_v34  ;;  %v3701_v22 = vcombine.low %v2017_v46, %v2019_v34 }
 0x6c7   : > { %v2236_v35 = vsel %vm407_vm7, %v2232_v42, %v2233_v58 }
 0x6c8   : > { %v2229_v26 = vpop.permute.xlu1 %2228  ;;  %2385 = vmatpush1.bf16.msra.mxu0 %v3703_v20  ;;  %v2237_v37 = vsel %vm383_vm10, %v2225_v27, %v2236_v35 }
 0x6c9   : > { %v2234_v38 = vrot.slane %v2229_v26, 4  ;;  %2386 = vmatprep.subr.bf16.mxu0 %v3702_v10 }
 0x6cb   : > { %v2238_v40 = vsel %vm407_vm7, %v2234_v38, %v2235_v24 }
 0x6cc   : > { %v2239_v15 = vsel %vm383_vm10, %v2229_v26, %v2238_v40  ;;  %2387 = vmatpush1.bf16.msra.mxu0 %v3701_v22 }
 0x6cd   : > { %v3717_v41 = vcombine.low %v2237_v37, %v2239_v15  ;;  %v3718_v39 = vcombine.high %v2237_v37, %v2239_v15 }
 0x6cf   : > { %2402 = vmatprep.subr.bf16.mxu0 %v3718_v39 }
 0x6d0   : > { %2403 = vmatpush2.bf16.msra.mxu0 %v3717_v41 }
 0x6d3   : > { %2405 = vmatmul.mubr.bf16.vlgmr.msra.gmra.mxu0 %v4059_v49 }
 0x6d4   : > { %3991 = vmatprep.mubr.f32.mxu0 %v4427_v0 }
 0x6d5   : > { %v2268_v36 = vpop.permute.xlu1 %2267 }
 0x793   : > { %v2406_v53 = vpop.f32.mrf.mxu0 }
 0x794   : > { %v4661_v55 = vadd.f32 %v2406_v53, %v2264_v51 }
 0x795   : > { %v2408_v43 = vpop.f32.mrf.mxu0 }
 0x796   : > { %v4663_v56 = vadd.f32 %v2408_v43, %v2264_v51 }
 0x797   : > { %v2410_v57 = vpop.f32.mrf.mxu0 }
 0x798   : > { %v2415_v29 = vadd.f32 %v4663_v56, %v4661_v55  ;;  %v4667_v61 = vadd.f32 %v2410_v57, %v2268_v36 }
 0x799   : > { %v2412_v45 = vpop.f32.mrf.mxu0 }
 0x79a   : > { %v4669_v62 = vadd.f32 %v2412_v45, %v2268_v36  ;;  %2416 = vadd.xlane.f32.xlu0 %v2415_v29 }
 0x79c   : > { %v2418_v5 = vadd.f32 %v4669_v62, %v4667_v61 }
 0x79e   : > { %2419 = vadd.xlane.f32.xlu1 %v2418_v5  ;;  %v4101_v5 = vld [vmem:[%s4197_s29 + $0x8] sm:$0xff] }
 0x823   : > { %v2417_v8 = vpop.xlane.xlu0 %2416 }
 0x824   : > { %v2453_v59 = vand.u32 4294901760, %v2417_v8 }
 0x826   : > { %v2545_v19 = vsub.f32 %v2417_v8, %v2453_v59  ;;  %v4102_v8 = vld [vmem:[%s4197_s29 + $0x18] sm:$0xff] }
 0x827   : > { %v2420_v47 = vpop.xlane.xlu1 %2419 }
 0x828   : > { %v2450_v11 = vand.u32 4294901760, %v2420_v47  ;;  %v2546_v12 = vand.u32 4294901760, %v2545_v19 }
 0x82a   : > { %v2538_v52 = vsub.f32 %v2420_v47, %v2450_v11  ;;  %3917 = vmatprep.subr.mxu1 %v2450_v11  ;;  %v2547_v60 = vsub.f32 %v2545_v19, %v2546_v12 }
 0x82b   : > { %3918 = vmatpush3.msra.mxu1 %v2450_v11 }
 0x82c   : > { %3919 = vmatprep.subr.mxu1 %v2453_v59  ;;  %v2539_v63 = vand.u32 4294901760, %v2538_v52  ;;  %v2548_v31 = vand.u32 4294901760, %v2547_v60 }
 0x82d   : > { %3920 = vmatpush3.msra.mxu1 %v2453_v59 }
 0x82e   : > { %3922 = vmatmul.mubr.f32.vlgmr.msra.gmra.mxu1 %v4454_v28  ;;  %v2540_v7 = vsub.f32 %v2538_v52, %v2539_v63 }
 0x82f   : > { %3928 = vmatprep.mubr.f32.mxu1 %v4427_v0 }
 0x830   : > { %v2541_v21 = vand.u32 4294901760, %v2540_v7 }
 0x832   : > { %3924 = vmatprep.subr.mxu1 %v2541_v21 }
 0x833   : > { %3925 = vmatpush3.msra.mxu1 %v2541_v21 }
 0x834   : > { %3926 = vmatprep.subr.mxu1 %v2548_v31 }
 0x835   : > { %3927 = vmatpush3.msra.mxu1 %v2548_v31 }
 0x836   : > { %3929 = vmatmul.mubr.f32.vlgmr.msra.gmra.mxu1 %v4444_v9  ;;  %3931 = vmatprep.subr.mxu1 %v2538_v52 }
 0x837   : > { %3932 = vmatpush3.msra.mxu1 %v2538_v52  ;;  %3935 = vmatprep.mubr.f32.mxu1 %v4430_v2  ;;  %v4104_v52 = vld [vmem:[%s4197_s29 + $0x10] sm:$0xff] }
 0x838   : > { %3933 = vmatprep.subr.mxu1 %v2545_v19 }
 0x839   : > { %3934 = vmatpush3.msra.mxu1 %v2545_v19 }
 0x83a   : > { %3936 = vmatmul.mubr.f32.vlgmr.msra.gmra.mxu1 %v4447_v14  ;;  %3938 = vmatprep.subr.mxu1 %v2450_v11 }
 0x83b   : > { %3939 = vmatpush3.msra.mxu1 %v2450_v11  ;;  %3942 = vmatprep.mubr.f32.mxu1 %v4433_v3 }
 0x83c   : > { %3940 = vmatprep.subr.mxu1 %v2453_v59 }
 0x83d   : > { %3941 = vmatpush3.msra.mxu1 %v2453_v59 }
 0x83e   : > { %3943 = vmatmul.mubr.f32.vlgmr.msra.gmra.mxu1 %v4450_v18  ;;  %3945 = vmatprep.subr.mxu1 %v2539_v63 }
 0x83f   : > { %3946 = vmatpush3.msra.mxu1 %v2539_v63  ;;  %3949 = vmatprep.mubr.f32.mxu1 %v4427_v0 }
 0x840   : > { %3947 = vmatprep.subr.mxu1 %v2546_v12 }
 0x841   : > { %3948 = vmatpush3.msra.mxu1 %v2546_v12 }
 0x842   : > { %3950 = vmatmul.mubr.f32.vlgmr.msra.gmra.mxu1 %v4444_v9  ;;  %3952 = vmatprep.subr.mxu1 %v2450_v11 }
 0x843   : > { %3953 = vmatpush3.msra.mxu1 %v2450_v11  ;;  %3956 = vmatprep.mubr.f32.mxu1 %v4427_v0  ;;  %v4103_v11 = vld [vmem:[%s4197_s29] sm:$0xff] }
 0x844   : > { %3954 = vmatprep.subr.mxu1 %v2453_v59  ;;  %v357_v12 = vpack.c.bf16 %v4104_v52, %v4103_v11 }
 0x845   : > { %3955 = vmatpush3.msra.mxu1 %v2453_v59  ;;  %v358_v59 = vpack.c.bf16 %v4102_v8, %v4101_v5 }
 0x846   : > { %3957 = vmatmul.mubr.f32.vlgmr.msra.gmra.mxu1 %v4444_v9 }
 0x847   : > { %3963 = vmatprep.mubr.f32.mxu1 %v4437_v6 }
 0x8ee   : > { %v3923_v17 = vpop.f32.mrf.mxu1 }
 0x8f0   : > { %v2494_v16 = vpop.f32.mrf.mxu1 }
 0x8f6   : > { %v3930_v50 = vpop.f32.mrf.mxu1 }
 0x8f7   : > { %v2592_v4 = vadd.f32 %v3930_v50, %v3923_v17 }
 0x8f8   : > { %v2585_v13 = vpop.f32.mrf.mxu1 }
 0x8f9   : > { %v2586_v30 = vadd.f32 %v2585_v13, %v2494_v16 }
 0x8fa   : > { %v3937_v23 = vpop.f32.mrf.mxu1 }
 0x8fb   : > { %v2675_v25 = vadd.f32 %v3937_v23, %v2592_v4 }
 0x8fc   : > { %v2667_v48 = vpop.f32.mrf.mxu1 }
 0x8fd   : > { %v2668_v46 = vadd.f32 %v2667_v48, %v2586_v30 }
 0x8fe   : > { %v3944_v54 = vpop.f32.mrf.mxu1 }
 0x8ff   : > { %v2758_v27 = vadd.f32 %v3944_v54, %v2675_v25 }
 0x900   : > { %v2749_v33 = vpop.f32.mrf.mxu1 }
 0x901   : > { %v2750_v20 = vadd.f32 %v2749_v33, %v2668_v46 }
 0x902   : > { %v3951_v44 = vpop.f32.mrf.mxu1 }
 0x903   : > { %v2841_v34 = vadd.f32 %v3951_v44, %v2758_v27 }
 0x904   : > { %v2834_v42 = vpop.f32.mrf.mxu1 }
 0x905   : > { %v2835_v58 = vadd.f32 %v2834_v42, %v2750_v20 }
 0x906   : > { %v3958_v32 = vpop.f32.mrf.mxu1 }
 0x907   : > { %v2920_v6 = vadd.f32 %v3958_v32, %v2841_v34 }
 0x908   : > { %v2913_v10 = vpop.f32.mrf.mxu1 }
 0x909   : > { %v2914_v26 = vadd.f32 %v2913_v10, %v2835_v58  ;;  %2930 = vperm.xlu1 %4045, %v2920_v6  }
 0x90b   : > { %2925 = vperm.xlu0 %4046, %v2914_v26  }
 0x984   : > { %v2931_v24 = vpop.permute.xlu1 %2930 }
 0x985   : > { %v4686_v35 = vsub.f32 %v4667_v61, %v2931_v24  ;;  %v4689_v38 = vsub.f32 %v4669_v62, %v2931_v24 }
 0x986   : > { %v2926_v22 = vpop.permute.xlu0 %2925 }
 0x987   : > { %v4692_v40 = vsub.f32 %v4661_v55, %v2926_v22  ;;  %v4695_v37 = vsub.f32 %v4663_v56, %v2926_v22  ;;  %v2939_v15 = vmul.f32 %v4686_v35, %v4686_v35  ;;  %v2940_v41 = vmul.f32 %v4689_v38, %v4689_v38 }
 0x989   : > { %v2944_v39 = vadd.f32 %v2940_v41, %v2939_v15  ;;  %v2937_v49 = vmul.f32 %v4692_v40, %v4692_v40  ;;  %v2938_v51 = vmul.f32 %v4695_v37, %v4695_v37 }
 0x98b   : > { %2945 = vadd.xlane.f32.xlu1 %v2944_v39  ;;  %v2941_v53 = vadd.f32 %v2938_v51, %v2937_v49 }
 0x98d   : > { %2942 = vadd.xlane.f32.xlu0 %v2941_v53 }
 0xa14   : > { %v2946_v43 = vpop.xlane.xlu1 %2945 }
 0xa15   : > { %v2976_v55 = vand.u32 4294901760, %v2946_v43 }
 0xa16   : > { %v2943_v56 = vpop.xlane.xlu0 %2942 }
 0xa17   : > { %v3064_v36 = vsub.f32 %v2946_v43, %v2976_v55  ;;  %v2979_v57 = vand.u32 4294901760, %v2943_v56  ;;  %3959 = vmatprep.subr.mxu1 %v2976_v55 }
 0xa18   : > { %3960 = vmatpush3.msra.mxu1 %v2976_v55 }
 0xa19   : > { %v3071_v29 = vsub.f32 %v2943_v56, %v2979_v57  ;;  %3961 = vmatprep.subr.mxu1 %v2979_v57  ;;  %v3065_v45 = vand.u32 4294901760, %v3064_v36 }
 0xa1a   : > { %3962 = vmatpush3.msra.mxu1 %v2979_v57 }
 0xa1b   : > { %3987 = vmatprep.subr.mxu0 %v3065_v45  ;;  %v3072_v61 = vand.u32 4294901760, %v3071_v29  ;;  %3964 = vmatmul.mubr.f32.vlgmr.msra.gmra.mxu1 %v4454_v28  ;;  %v3066_v62 = vsub.f32 %v3064_v36, %v3065_v45  ;;  %v4060_v28 = vld [vmem:[%s4747_s4] sm:$0xff]  }
 0xa1c   : > { %3988 = vmatpush3.msra.mxu0 %v3065_v45  ;;  %3970 = vmatprep.mubr.f32.mxu1 %v4427_v0 }
 0xa1d   : > { %3989 = vmatprep.subr.mxu0 %v3072_v61  ;;  %v3067_v19 = vand.u32 4294901760, %v3066_v62  ;;  %v3073_v47 = vsub.f32 %v3071_v29, %v3072_v61 }
 0xa1e   : > { %3990 = vmatpush3.msra.mxu0 %v3072_v61 }
 0xa1f   : > { %3966 = vmatprep.subr.mxu1 %v3067_v19  ;;  %v3074_v63 = vand.u32 4294901760, %v3073_v47  ;;  %3992 = vmatmul.mubr.f32.vlgmr.msra.gmra.mxu0 %v4444_v9 }
 0xa20   : > { %3967 = vmatpush3.msra.mxu1 %v3067_v19  ;;  %3549 = vmatprep.subr.bf16.mxu0 %v358_v59 }
 0xa21   : > { %3968 = vmatprep.subr.mxu1 %v3074_v63  ;;  %3550 = vmatpush1.bf16.msra.mxu0 %v357_v12 }
 0xa22   : > { %3969 = vmatpush3.msra.mxu1 %v3074_v63  ;;  %3567 = vmatprep.mubr.bf16.mxu0 %v4119_v1 }
 0xa23   : > { %3971 = vmatmul.mubr.f32.vlgmr.msra.gmra.mxu1 %v4444_v9  ;;  %3973 = vmatprep.subr.mxu1 %v3064_v36 }
 0xa24   : > { %3974 = vmatpush3.msra.mxu1 %v3064_v36  ;;  %3977 = vmatprep.mubr.f32.mxu1 %v4430_v2  ;;  %v4132_v2 = vmov 4  }
 0xa25   : > { %3975 = vmatprep.subr.mxu1 %v3071_v29  ;;  %3725 = vmatmul.mubr.msk.bf16.vlgmr.msra.gmra.mxu0 %vm438_vm12, %v4060_v28 }
 0xa26   : > { %3976 = vmatpush3.msra.mxu1 %v3071_v29  ;;  %4047 = vset.pattern.permute.xlu1 %v4132_v2 }
 0xa27   : > { %3978 = vmatmul.mubr.f32.vlgmr.msra.gmra.mxu1 %v4447_v14  ;;  %3980 = vmatprep.subr.mxu1 %v2976_v55  ;;  %v4105_v14 = vld [vmem:[%s4748_s5] sm:$0xff] }
 0xa28   : > { %3981 = vmatpush3.msra.mxu1 %v2976_v55  ;;  %3984 = vmatprep.mubr.f32.mxu1 %v4433_v3  ;;  %v4106_v3 = vld [vmem:[%s4748_s5 + $0x8] sm:$0xff] }
 0xa29   : > { %3982 = vmatprep.subr.mxu1 %v2979_v57  ;;  %4048 = vset.pattern.permute.xlu0 %v4132_v2 }
 0xa2a   : > { %3983 = vmatpush3.msra.mxu1 %v2979_v57  ;;  %3466 = vperm.xlu1 %4047, %v4105_v14  }
 0xa2b   : > { %3985 = vmatmul.mubr.f32.vlgmr.msra.gmra.mxu1 %v4450_v18  ;;  %3994 = vmatprep.subr.mxu1 %v2976_v55  ;;  %v4133_v18 = vmov 5  }
 0xa2c   : > { %3995 = vmatpush3.msra.mxu1 %v2976_v55  ;;  %3998 = vmatprep.mubr.f32.mxu1 %v4427_v0  ;;  %v4134_v0 = vmov 6  }
 0xa2d   : > { %3996 = vmatprep.subr.mxu1 %v2979_v57  ;;  %3470 = vperm.xlu0 %4048, %v4106_v3  }
 0xa2e   : > { %3997 = vmatpush3.msra.mxu1 %v2979_v57  ;;  %4049 = vset.pattern.permute.xlu1 %v4133_v18 }
 0xa2f   : > { %3999 = vmatmul.mubr.f32.vlgmr.msra.gmra.mxu1 %v4444_v9  ;;  %3478 = vperm.xlu1 %4049, %v4105_v14  }
 0xa31   : > { %4053 = vset.pattern.permute.xlu0 %v4134_v0 }
 0xa33   : > { %4050 = vset.pattern.permute.xlu1 %v4119_v1 }
 0xaa5   : > { %v3467_v10 = vpop.permute.xlu1 %3466 }
 0xaa8   : > { %v3471_v39 = vpop.permute.xlu0 %3470 }
 0xaaa   : > { %v3479_v26 = vpop.permute.xlu1 %3478 }
 0xadb   : > { %v3965_v9 = vpop.f32.mrf.mxu1 }
 0xadc   : > { %v3031_v31 = vadd.f32 1e-05, %v3965_v9 }
 0xadd   : > { %v3020_v7 = vpop.f32.mrf.mxu1 }
 0xade   : > { %v3021_v16 = vadd.f32 1e-05, %v3020_v7 }
 0xadf   : > { %v3993_v4 = vpop.f32.mrf.mxu0 }
 0xae1   : > { %v3360_v46 = vpop.f32.mrf.mxu0 }
 0xae3   : > { %v3972_v60 = vpop.f32.mrf.mxu1 }
 0xae4   : > { %v3118_v50 = vadd.f32 %v3972_v60, %v3031_v31 }
 0xae5   : > { %v3111_v21 = vpop.f32.mrf.mxu1  ;;  %v3569_v12 = vpop.f32.mrf.mxu0 }
 0xae6   : > { %v3112_v23 = vadd.f32 %v3111_v21, %v3021_v16 }
 0xae7   : > { %v3979_v17 = vpop.f32.mrf.mxu1  ;;  %v3571_v63 = vpop.f32.mrf.mxu0 }
 0xae8   : > { %v3201_v48 = vadd.f32 %v3979_v17, %v3118_v50 }
 0xae9   : > { %v3193_v13 = vpop.f32.mrf.mxu1  ;;  %v3573_v2 = vpop.f32.mrf.mxu0 }
 0xaea   : > { %v3194_v33 = vadd.f32 %v3193_v13, %v3112_v23 }
 0xaeb   : > { %v3986_v54 = vpop.f32.mrf.mxu1  ;;  %v3575_v7 = vpop.f32.mrf.mxu0 }
 0xaec   : > { %v3284_v30 = vadd.f32 %v3986_v54, %v3201_v48 }
 0xaed   : > { %v3275_v25 = vpop.f32.mrf.mxu1 }
 0xaee   : > { %v3367_v44 = vadd.f32 %v3993_v4, %v3284_v30  ;;  %v3276_v1 = vadd.f32 %v3275_v25, %v3194_v33 }
 0xaef   : > { %v4000_v27 = vpop.f32.mrf.mxu1 }
 0xaf0   : > { %v3361_v42 = vadd.f32 %v3360_v46, %v3276_v1  ;;  %v3446_v20 = vadd.f32 %v4000_v27, %v3367_v44 }
 0xaf1   : > { %v3439_v34 = vpop.f32.mrf.mxu1 }
 0xaf2   : > { %4081 = vrsqrt.f32 %v3446_v20  ;;  %v3440_v32 = vadd.f32 %v3439_v34, %v3361_v42 }
 0xaf4   : > { %4083 = vrsqrt.f32 %v3440_v32 }
 0xaff   : > { %v4082_v58 = vpop.eup %4081 }
 0xb00   : > { %3458 = vperm.xlu1 %4050, %v4082_v58  }
 0xb01   : > { %v4084_v6 = vpop.eup %4083 }
 0xb04   : > { %3453 = vperm.xlu1 %4050, %v4084_v6  }
 0xb08   : > { %4051 = vset.pattern.permute.xlu1 %v4133_v18 }
 0xb09   : > { %3482 = vperm.xlu1 %4051, %v4106_v3  }
 0xb0d   : > { %4052 = vset.pattern.permute.xlu1 %v4134_v0 }
 0xb0e   : > { %3520 = vperm.xlu1 %4052, %v4105_v14  }
 0xb12   : > { %3524 = vperm.xlu1 %4052, %v4106_v3  }
 0xb7b   : > { %v3459_v24 = vpop.permute.xlu1 %3458 }
 0xb7c   : > { %v3463_v22 = vmul.f32 %v3459_v24, %v4686_v35  ;;  %v3464_v15 = vmul.f32 %v3459_v24, %v4689_v38 }
 0xb7e   : > { %v3475_v55 = vmul.f32 %v3471_v39, %v3463_v22  ;;  %v3476_v56 = vmul.f32 %v3471_v39, %v3464_v15 }
 0xb7f   : > { %v3454_v41 = vpop.permute.xlu1 %3453 }
 0xb80   : > { %v3461_v49 = vmul.f32 %v3454_v41, %v4692_v40  ;;  %v3462_v51 = vmul.f32 %v3454_v41, %v4695_v37 }
 0xb82   : > { %v3473_v53 = vmul.f32 %v3467_v10, %v3461_v49  ;;  %v3474_v43 = vmul.f32 %v3467_v10, %v3462_v51 }
 0xb84   : > { %v3485_v36 = vadd.f32 %v3479_v26, %v3473_v53  ;;  %v3486_v57 = vadd.f32 %v3479_v26, %v3474_v43  ;;  %v3483_v29 = vpop.permute.xlu1 %3482 }
 0xb85   : > { %v3487_v45 = vadd.f32 %v3483_v29, %v3475_v55  ;;  %v3488_v61 = vadd.f32 %v3483_v29, %v3476_v56 }
 0xb86   : > { %v3720_v62 = vmul.f32 -1.442695, %v3485_v36  ;;  %v3721_v5 = vmul.f32 -1.442695, %v3486_v57 }
 0xb87   : > { %v3722_v35 = vmul.f32 -1.442695, %v3487_v45  ;;  %v3723_v8 = vmul.f32 -1.442695, %v3488_v61 }
 0xb88   : > { %4085 = vpow2.f32 %v3720_v62 }
 0xb89   : > { %4087 = vpow2.f32 %v3721_v5  ;;  %v3521_v28 = vpop.permute.xlu1 %3520 }
 0xb8a   : > { %4089 = vpow2.f32 %v3722_v35  ;;  %v3570_v9 = vadd.f32 %v3569_v12, %v3521_v28  ;;  %v3572_v31 = vadd.f32 %v3571_v63, %v3521_v28 }
 0xb8b   : > { %4091 = vpow2.f32 %v3723_v8 }
 0xb8d   : > { %v3525_v3 = vpop.permute.xlu1 %3524 }
 0xb8e   : > { %v3574_v13 = vadd.f32 %v3573_v2, %v3525_v3  ;;  %v3576_v54 = vadd.f32 %v3575_v7, %v3525_v3 }
 0xb95   : > { %v4086_v38 = vpop.eup %4085 }
 0xb96   : > { %v4088_v40 = vpop.eup %4087  ;;  %v3501_v37 = vadd.f32 1.0, %v4086_v38 }
 0xb97   : > { %v4090_v59 = vpop.eup %4089  ;;  %v3502_v19 = vadd.f32 1.0, %v4088_v40 }
 0xb98   : > { %v4092_v47 = vpop.eup %4091  ;;  %4093 = vrcp.f32 %v3501_v37  ;;  %v3503_v11 = vadd.f32 1.0, %v4090_v59 }
 0xb99   : > { %4095 = vrcp.f32 %v3502_v19  ;;  %v3504_v52 = vadd.f32 1.0, %v4092_v47 }
 0xb9a   : > { %4097 = vrcp.f32 %v3503_v11 }
 0xb9b   : > { %4099 = vrcp.f32 %v3504_v52 }
 0xba5   : > { %v4094_v14 = vpop.eup %4093 }
 0xba6   : > { %v4096_v18 = vpop.eup %4095  ;;  %v3513_v0 = vmul.f32 %v4094_v14, %v3485_v36 }
 0xba7   : > { %v4098_v60 = vpop.eup %4097  ;;  %v3514_v21 = vmul.f32 %v4096_v18, %v3486_v57 }
 0xba8   : > { %v4100_v17 = vpop.eup %4099  ;;  %v3515_v16 = vmul.f32 %v4098_v60, %v3487_v45  ;;  %v3578_v50 = vadd.f32 %v3570_v9, %v3513_v0 }
 0xba9   : > { %v3516_v23 = vmul.f32 %v4100_v17, %v3488_v61  ;;  %v3579_v48 = vadd.f32 %v3572_v31, %v3514_v21 }
 0xbaa   : > { %3582 = vst [vmem:[%s298_s23] sm:$0xff] %v3578_v50  ;;  %v3580_v4 = vadd.f32 %v3574_v13, %v3515_v16 }
 0xbab   : > { %3583 = vst [vmem:[%s298_s23 + $0x8] sm:$0xff] %v3579_v48  ;;  %v3581_v33 = vadd.f32 %v3576_v54, %v3516_v23 }
 0xbac   : > { %3584 = vst [vmem:[%s298_s23 + $0x10] sm:$0xff] %v3580_v4 }
 0xbad   : > { %3585 = vst [vmem:[%s298_s23 + $0x18] sm:$0xff] %v3581_v33 }
 0xbae PF: > { %s17_s24 = sadd.s32 1, %s4117_s24  }
 0xbaf   : > { %p14_p4 = scmp.ge.s32.totalorder %s17_s24, 4  }
 0xbb1   :  { %16 = sbr.rel (!%p14_p4) target bundleno = 1 (0x1), region = 81 }

</bundles_post_ra>
